<compile_context>
chip_gen: v6e
topology: v6e:2x2x1
jax: 0.10.0
libtpu: 0.0.40
codegen_flags: <defaults>
</compile_context>

<pallas_src>
import jax
import jax.numpy as jnp
from jax.experimental import pallas as pl
from jax.experimental.pallas import tpu as pltpu


def _se_gate_kernel(s_ref, x_ref, o_ref):
    # s_ref: (TC, 1) per-channel gate logits; x_ref / o_ref: (TC, HW).
    # Sigmoid on the tiny gate in f32 (EUP), multiply in the activation dtype.
    gate = jax.nn.sigmoid(s_ref[...].astype(jnp.float32)).astype(x_ref.dtype)
    o_ref[...] = (gate * x_ref[...]).astype(o_ref.dtype)


def _round_up(x: int, m: int) -> int:
    return ((x + m - 1) // m) * m


def _tensorcores_per_device() -> int:
    # v7x exposes 2 TensorCores per device; v5e/v6e are single-TC devices.
    # Heuristic on device_kind; any failure falls back to the safe 1-TC path.
    try:
        kind = jax.devices()[0].device_kind.lower()
    except Exception:
        return 1
    return 2 if "7" in kind else 1


def _pick_channel_tile(nc: int, hw: int, itemsize: int, num_tc: int) -> int:
    """Channel-tile: full block on 1-TC chips, 2 blocks on 2-TC chips, VMEM-capped."""
    lanes_padded = _round_up(hw, 128)
    # Double-buffered (x2) input + output (x2) tiles dominate per-step VMEM use.
    bytes_per_row = 2 * 2 * lanes_padded * itemsize
    vmem_budget = 16 * 1024 * 1024
    max_rows = max(8, (vmem_budget // bytes_per_row) // 8 * 8)

    tc = nc
    if num_tc >= 2 and nc % 2 == 0 and (nc // 2) % 8 == 0:
        tc = nc // 2  # one block per TensorCore on dual-TC chips
    # Shrink by powers of two while remaining a sublane-aligned divisor of nc.
    while tc > max_rows and tc % 16 == 0:
        tc //= 2
    return tc


def sigmoid_mul(x141, x137, *, donate_input: bool = False):
    """sigmoid(x141) * x137 with broadcasting, PyTorch NCHW semantics.

    x141: (N, C, 1, 1), x137: (N, C, H, W). Returns (N, C, H, W).
    Set donate_input=True only if x137 is dead after this call (aliases it to
    the output buffer).
    """
    N, C, H, W = x137.shape
    assert x141.shape == (N, C, 1, 1)
    NC, HW = N * C, H * W

    itemsize = jnp.dtype(x137.dtype).itemsize
    num_tc = _tensorcores_per_device()
    tc = _pick_channel_tile(NC, HW, itemsize, num_tc)
    assert NC % tc == 0 and (tc % 8 == 0 or tc == NC)

    # Channel-major 2-D views (free reshapes; lane axis HW kept whole).
    s2d = x141.reshape(NC, 1)
    x2d = x137.reshape(NC, HW)

    cost = pl.CostEstimate(
        flops=NC * HW,              # one multiply per element
        transcendentals=NC,         # one sigmoid per channel
        bytes_accessed=2 * NC * HW * itemsize + NC * jnp.dtype(x141.dtype).itemsize,
    )

    out2d = pl.pallas_call(
        _se_gate_kernel,
        out_shape=jax.ShapeDtypeStruct((NC, HW), x137.dtype),
        grid_spec=pltpu.PrefetchScalarGridSpec(
            num_scalar_prefetch=0,
            grid=(NC // tc,),
            in_specs=[
                pl.BlockSpec((tc, 1), lambda i: (i, 0)),    # per-channel gate logits
                pl.BlockSpec((tc, HW), lambda i: (i, 0)),   # activation tile
            ],
            out_specs=pl.BlockSpec((tc, HW), lambda i: (i, 0)),
        ),
        compiler_params=pltpu.CompilerParams(
            dimension_semantics=("parallel",),
        ),
        cost_estimate=cost,
        input_output_aliases=({1: 0} if donate_input else {}),
    )(s2d, x2d)

    return out2d.reshape(N, C, H, W)


if __name__ == "__main__":
    # Shapes match the PyTorch module: x137 [1,768,14,14], x141 [1,768,1,1]
    key = jax.random.PRNGKey(0)
    k1, k2 = jax.random.split(key)
    x137 = jax.random.normal(k1, (1, 768, 14, 14), dtype=jnp.float32)
    x141 = jax.random.normal(k2, (1, 768, 1, 1), dtype=jnp.float32)

    out = sigmoid_mul(x141, x137)
    out = jax.block_until_ready(out)

    # Reference check (plain JAX).
    ref = jax.nn.sigmoid(x141) * x137
    assert out.shape == (1, 768, 14, 14)
    assert jnp.allclose(out, ref, atol=1e-6, rtol=1e-6)
    print("KERNEL_OK")
</pallas_src>

<mosaic_0001>
module attributes {stable_mosaic.version = 11 : i64} {
  func.func @_se_gate_kernel(%arg0: i32, %arg1: memref<768x1xf32, #tpu.memory_space<vmem>>, %arg2: memref<768x196xf32, #tpu.memory_space<vmem>>, %arg3: memref<768x196xf32, #tpu.memory_space<vmem>>) attributes {dimension_semantics = [#tpu.dimension_semantics<parallel>], iteration_bounds = array<i64: 1>, scalar_prefetch = 0 : i64, scratch_operands = 0 : i64, tpu.core_type = #tpu.core_type<tc>, window_params = [{transform_indices = @transform_0, window_bounds = array<i64: 768, 1>}, {transform_indices = @transform_1, window_bounds = array<i64: 768, 196>}, {transform_indices = @transform_2, window_bounds = array<i64: 768, 196>}]} {
    %c0 = arith.constant 0 : index
    %c0_0 = arith.constant 0 : index
    %0 = vector.load %arg1[%c0, %c0_0] : memref<768x1xf32, #tpu.memory_space<vmem>>, vector<768x1xf32>
    %1 = arith.negf %0 : vector<768x1xf32>
    %2 = math.exp %1 : vector<768x1xf32>
    %cst = arith.constant 1.000000e+00 : f32
    %3 = vector.broadcast %cst : f32 to vector<768x1xf32>
    %4 = arith.addf %3, %2 : vector<768x1xf32>
    %5 = arith.divf %3, %4 : vector<768x1xf32>
    %c0_1 = arith.constant 0 : index
    %c0_2 = arith.constant 0 : index
    %6 = vector.load %arg2[%c0_1, %c0_2] : memref<768x196xf32, #tpu.memory_space<vmem>>, vector<768x196xf32>
    %7 = vector.broadcast %5 : vector<768x1xf32> to vector<768x196xf32>
    %8 = arith.mulf %7, %6 : vector<768x196xf32>
    %c0_3 = arith.constant 0 : index
    %c0_4 = arith.constant 0 : index
    %9 = vector.load %arg3[%c0_3, %c0_4] : memref<768x196xf32, #tpu.memory_space<vmem>>, vector<768x196xf32>
    tpu.vector_store %arg3[%c0_3, %c0_4], %8 {strides = array<i32>} : memref<768x196xf32, #tpu.memory_space<vmem>>, vector<768x196xf32>,
    return
  }
  func.func @transform_0(%arg0: i32) -> (i32, i32) {
    %c0_i32 = arith.constant 0 : i32
    %c0_i32_0 = arith.constant 0 : i32
    return %arg0, %c0_i32 : i32, i32
  }
  func.func @transform_1(%arg0: i32) -> (i32, i32) {
    %c0_i32 = arith.constant 0 : i32
    %c0_i32_0 = arith.constant 0 : i32
    return %arg0, %c0_i32 : i32, i32
  }
  func.func @transform_2(%arg0: i32) -> (i32, i32) {
    %c0_i32 = arith.constant 0 : i32
    %c0_i32_0 = arith.constant 0 : i32
    return %arg0, %c0_i32 : i32, i32
  }
}

</mosaic_0001>

<bundles_post_ra>
// kernel: tpu_custom_call.1
= control target key start
LH: loop header
LB: loop body
LE: loop exit
PB: predicated region body
PF: predicated region fallthrough
CT: control target
= control target key end

     0   :  { %v2227_v0 = vmov 0   ;;  %vm1548_vm0 = vcmask 556032   ;;  %s3797_s0 = inlined_call_operand.vmem [shape: f32[768,1], index: 0, kind: input, shape index: {}]   ;;  %s3798_s1 = inlined_call_operand.vmem [shape: f32[768,196], index: 1, kind: input, shape index: {}]   ;;  %s3799_s2 = inlined_call_operand.vmem [shape: f32[768,196], index: 2, kind: output, shape index: {}]  }
   0x1   :  { %1842 = vset.pattern.permute.xlu1 %v2227_v0  ;;  %1841 = vset.pattern.permute.xlu0 %v2227_v0  ;;  %v13_v1 = vld [vmem:[%s3797_s0 + $0x10] sm:$0xff]  ;;  %v11_v2 = vld [vmem:[%s3797_s0] sm:$0xff]  ;;  %v14_v3 = vld [vmem:[%s3797_s0 + $0x18] sm:$0xff] }
   0x2   :  { %v1746_v4 = vmul.f32 -1.442695, %v13_v1  ;;  %v1744_v5 = vmul.f32 -1.442695, %v11_v2  ;;  %v1747_v6 = vmul.f32 -1.442695, %v14_v3 }
   0x3   :  { %v12_v7 = vld [vmem:[%s3797_s0 + $0x8] sm:$0xff]  ;;  %v15_v9 = vld [vmem:[%s3797_s0 + $0x20] sm:$0xff]  ;;  %v18_v13 = vld [vmem:[%s3797_s0 + $0x38] sm:$0xff] }
   0x4   :  { %v16_v8 = vld [vmem:[%s3797_s0 + $0x28] sm:$0xff]  ;;  %1843 = vpow2.f32 %v1746_v4  ;;  %v1745_v10 = vmul.f32 -1.442695, %v12_v7  ;;  %v1748_v12 = vmul.f32 -1.442695, %v15_v9  ;;  %v17_v14 = vld [vmem:[%s3797_s0 + $0x30] sm:$0xff] }
   0x5   :  { %v1749_v11 = vmul.f32 -1.442695, %v16_v8  ;;  %1845 = vpow2.f32 %v1744_v5  ;;  %v20_v15 = vld [vmem:[%s3797_s0 + $0x48] sm:$0xff]  ;;  %v1751_v16 = vmul.f32 -1.442695, %v18_v13  ;;  %v19_v18 = vld [vmem:[%s3797_s0 + $0x40] sm:$0xff] }
   0x6   :  { %1847 = vpow2.f32 %v1747_v6  ;;  %v1750_v17 = vmul.f32 -1.442695, %v17_v14  ;;  %v22_v19 = vld [vmem:[%s3797_s0 + $0x58] sm:$0xff]  ;;  %v1753_v20 = vmul.f32 -1.442695, %v20_v15  ;;  %v21_v21 = vld [vmem:[%s3797_s0 + $0x50] sm:$0xff] }
   0x7   :  { %1849 = vpow2.f32 %v1745_v10  ;;  %v1752_v22 = vmul.f32 -1.442695, %v19_v18  ;;  %v24_v23 = vld [vmem:[%s3797_s0 + $0x68] sm:$0xff]  ;;  %v1755_v24 = vmul.f32 -1.442695, %v22_v19  ;;  %v23_v25 = vld [vmem:[%s3797_s0 + $0x60] sm:$0xff] }
   0x8   :  { %1851 = vpow2.f32 %v1749_v11  ;;  %v1754_v26 = vmul.f32 -1.442695, %v21_v21  ;;  %v26_v27 = vld [vmem:[%s3797_s0 + $0x78] sm:$0xff]  ;;  %v1757_v28 = vmul.f32 -1.442695, %v24_v23  ;;  %v25_v29 = vld [vmem:[%s3797_s0 + $0x70] sm:$0xff] }
   0x9   :  { %1853 = vpow2.f32 %v1748_v12  ;;  %v1756_v30 = vmul.f32 -1.442695, %v23_v25  ;;  %v1759_v31 = vmul.f32 -1.442695, %v26_v27  ;;  %v1758_v32 = vmul.f32 -1.442695, %v25_v29 }
   0xa   :  { %1855 = vpow2.f32 %v1751_v16  ;;  %v28_v58 = vld [vmem:[%s3797_s0 + $0x88] sm:$0xff]  ;;  %v27_v61 = vld [vmem:[%s3797_s0 + $0x80] sm:$0xff]  ;;  %v30_v0 = vld [vmem:[%s3797_s0 + $0x98] sm:$0xff] }
   0xb   :  { %1857 = vpow2.f32 %v1750_v17  ;;  %v1761_v3 = vmul.f32 -1.442695, %v28_v58  ;;  %v29_v4 = vld [vmem:[%s3797_s0 + $0x90] sm:$0xff]  ;;  %v1760_v7 = vmul.f32 -1.442695, %v27_v61  ;;  %v32_v8 = vld [vmem:[%s3797_s0 + $0xa8] sm:$0xff] }
   0xc   :  { %1859 = vpow2.f32 %v1753_v20  ;;  %v1763_v10 = vmul.f32 -1.442695, %v30_v0  ;;  %v31_v11 = vld [vmem:[%s3797_s0 + $0xa0] sm:$0xff]  ;;  %v1762_v13 = vmul.f32 -1.442695, %v29_v4  ;;  %v34_v14 = vld [vmem:[%s3797_s0 + $0xb8] sm:$0xff] }
   0xd   :  { %1861 = vpow2.f32 %v1752_v22  ;;  %v1765_v16 = vmul.f32 -1.442695, %v32_v8  ;;  %v33_v17 = vld [vmem:[%s3797_s0 + $0xb0] sm:$0xff]  ;;  %v1764_v19 = vmul.f32 -1.442695, %v31_v11  ;;  %v36_v20 = vld [vmem:[%s3797_s0 + $0xc8] sm:$0xff] }
   0xe   :  { %1863 = vpow2.f32 %v1755_v24  ;;  %v1767_v22 = vmul.f32 -1.442695, %v34_v14  ;;  %v35_v23 = vld [vmem:[%s3797_s0 + $0xc0] sm:$0xff]  ;;  %v1766_v25 = vmul.f32 -1.442695, %v33_v17  ;;  %v37_v29 = vld [vmem:[%s3797_s0 + $0xd0] sm:$0xff] }
   0xf   :  { %1865 = vpow2.f32 %v1754_v26  ;;  %v38_v26 = vld [vmem:[%s3797_s0 + $0xd8] sm:$0xff] }
  0x10   :  { %1867 = vpow2.f32 %v1757_v28  ;;  %v1769_v28 = vmul.f32 -1.442695, %v36_v20  ;;  %v45_v20 = vld [vmem:[%s3797_s0 + $0x110] sm:$0xff] }
  0x11   :  { %v1844_v33 = vpop.eup %1843  ;;  %1869 = vpow2.f32 %v1756_v30 }
  0x12   :  { %v1846_v34 = vpop.eup %1845  ;;  %v397_v35 = vadd.f32 1.0, %v1844_v33  ;;  %1871 = vpow2.f32 %v1759_v31  ;;  %v1768_v31 = vmul.f32 -1.442695, %v35_v23 }
  0x13   :  { %v1848_v36 = vpop.eup %1847  ;;  %v395_v37 = vadd.f32 1.0, %v1846_v34  ;;  %1873 = vpow2.f32 %v1758_v32  ;;  %v40_v32 = vld [vmem:[%s3797_s0 + $0xe8] sm:$0xff]  ;;  %v1771_v34 = vmul.f32 -1.442695, %v38_v26 }
  0x14   :  { %v1850_v38 = vpop.eup %1849  ;;  %1875 = vrcp.f32 %v397_v35  ;;  %v398_v39 = vadd.f32 1.0, %v1848_v36  ;;  %v39_v35 = vld [vmem:[%s3797_s0 + $0xe0] sm:$0xff] }
  0x15   :  { %v1852_v40 = vpop.eup %1851  ;;  %1877 = vrcp.f32 %v395_v37  ;;  %v396_v41 = vadd.f32 1.0, %v1850_v38  ;;  %v1770_v37 = vmul.f32 -1.442695, %v37_v29  ;;  %v42_v38 = vld [vmem:[%s3797_s0 + $0xf8] sm:$0xff]  ;;  %v1778_v29 = vmul.f32 -1.442695, %v45_v20 }
  0x16   :  { %v1854_v42 = vpop.eup %1853  ;;  %1879 = vrcp.f32 %v398_v39  ;;  %v400_v43 = vadd.f32 1.0, %v1852_v40  ;;  %v1773_v40 = vmul.f32 -1.442695, %v40_v32 }
  0x17   :  { %v1856_v44 = vpop.eup %1855  ;;  %1881 = vrcp.f32 %v396_v41  ;;  %v399_v45 = vadd.f32 1.0, %v1854_v42  ;;  %v41_v41 = vld [vmem:[%s3797_s0 + $0xf0] sm:$0xff] }
  0x18   :  { %v1858_v46 = vpop.eup %1857  ;;  %1883 = vrcp.f32 %v400_v43  ;;  %v402_v47 = vadd.f32 1.0, %v1856_v44  ;;  %v1772_v43 = vmul.f32 -1.442695, %v39_v35 }
  0x19   :  { %v1860_v48 = vpop.eup %1859  ;;  %1885 = vrcp.f32 %v399_v45  ;;  %v401_v49 = vadd.f32 1.0, %v1858_v46  ;;  %v1775_v45 = vmul.f32 -1.442695, %v42_v38 }
  0x1a   :  { %v1862_v50 = vpop.eup %1861  ;;  %1887 = vrcp.f32 %v402_v47  ;;  %v404_v51 = vadd.f32 1.0, %v1860_v48  ;;  %v1774_v47 = vmul.f32 -1.442695, %v41_v41 }
  0x1b   :  { %v1864_v52 = vpop.eup %1863  ;;  %1889 = vrcp.f32 %v401_v49  ;;  %v403_v53 = vadd.f32 1.0, %v1862_v50 }
  0x1c   :  { %v1866_v54 = vpop.eup %1865  ;;  %1891 = vrcp.f32 %v404_v51  ;;  %v406_v55 = vadd.f32 1.0, %v1864_v52 }
  0x1d   :  { %v1868_v56 = vpop.eup %1867  ;;  %1893 = vrcp.f32 %v403_v53  ;;  %v405_v57 = vadd.f32 1.0, %v1866_v54 }
  0x1e   :  { %v1870_v59 = vpop.eup %1869  ;;  %1895 = vrcp.f32 %v406_v55  ;;  %v408_v60 = vadd.f32 1.0, %v1868_v56 }
  0x1f   :  { %v1872_v62 = vpop.eup %1871  ;;  %1897 = vrcp.f32 %v405_v57  ;;  %v407_v63 = vadd.f32 1.0, %v1870_v59 }
  0x20   :  { %v1874_v1 = vpop.eup %1873  ;;  %1899 = vrcp.f32 %v408_v60  ;;  %v410_v2 = vadd.f32 1.0, %v1872_v62 }
  0x21   :  { %v1876_v5 = vpop.eup %1875  ;;  %1901 = vrcp.f32 %v407_v63  ;;  %v409_v6 = vadd.f32 1.0, %v1874_v1 }
  0x22   :  { %v1878_v9 = vpop.eup %1877  ;;  %887 = vperm.xlu1 %1842, %v1876_v5   ;;  %1903 = vrcp.f32 %v410_v2 }
  0x23   :  { %v1880_v12 = vpop.eup %1879  ;;  %877 = vperm.xlu0 %1841, %v1878_v9   ;;  %1905 = vrcp.f32 %v409_v6 }
  0x24   :  { %v1882_v15 = vpop.eup %1881  ;;  %1907 = vpow2.f32 %v1761_v3 }
  0x25   :  { %v1884_v18 = vpop.eup %1883  ;;  %1909 = vpow2.f32 %v1760_v7 }
  0x26   :  { %v1886_v21 = vpop.eup %1885  ;;  %892 = vperm.xlu1 %1842, %v1880_v12   ;;  %1911 = vpow2.f32 %v1763_v10  ;;  %v44_v10 = vld [vmem:[%s3797_s0 + $0x108] sm:$0xff] }
  0x27   :  { %v1888_v24 = vpop.eup %1887  ;;  %882 = vperm.xlu0 %1841, %v1882_v15   ;;  %1913 = vpow2.f32 %v1762_v13  ;;  %v43_v13 = vld [vmem:[%s3797_s0 + $0x100] sm:$0xff] }
  0x28   :  { %v1890_v27 = vpop.eup %1889  ;;  %1915 = vpow2.f32 %v1765_v16  ;;  %v46_v16 = vld [vmem:[%s3797_s0 + $0x118] sm:$0xff]  ;;  %v1776_v23 = vmul.f32 -1.442695, %v43_v13 }
  0x29   :  { %v1892_v30 = vpop.eup %1891  ;;  %1917 = vpow2.f32 %v1764_v19  ;;  %v1777_v19 = vmul.f32 -1.442695, %v44_v10  ;;  %v1779_v26 = vmul.f32 -1.442695, %v46_v16 }
  0x2a   :  { %v1894_v33 = vpop.eup %1893  ;;  %902 = vperm.xlu1 %1842, %v1884_v18   ;;  %1919 = vpow2.f32 %v1767_v22 }
  0x2b   :  { %v1896_v36 = vpop.eup %1895  ;;  %897 = vperm.xlu0 %1841, %v1886_v21   ;;  %1921 = vpow2.f32 %v1766_v25 }
  0x2c   :  { %v1898_v39 = vpop.eup %1897  ;;  %1923 = vpow2.f32 %v1769_v28 }
  0x2d   :  { %v1900_v42 = vpop.eup %1899  ;;  %1925 = vpow2.f32 %v1768_v31 }
  0x2e   :  { %v1902_v44 = vpop.eup %1901  ;;  %912 = vperm.xlu1 %1842, %v1888_v24   ;;  %1927 = vpow2.f32 %v1771_v34  ;;  %v48_v24 = vld [vmem:[%s3797_s0 + $0x128] sm:$0xff] }
  0x2f   :  { %v1904_v46 = vpop.eup %1903  ;;  %907 = vperm.xlu0 %1841, %v1890_v27   ;;  %1929 = vpow2.f32 %v1770_v37  ;;  %v47_v27 = vld [vmem:[%s3797_s0 + $0x120] sm:$0xff]  ;;  %v1781_v32 = vmul.f32 -1.442695, %v48_v24 }
  0x30   :  { %v1906_v48 = vpop.eup %1905  ;;  %1931 = vpow2.f32 %v1773_v40  ;;  %v1780_v35 = vmul.f32 -1.442695, %v47_v27 }
  0x31   :  { %v1908_v49 = vpop.eup %1907  ;;  %1933 = vpow2.f32 %v1772_v43 }
  0x32   :  { %v1910_v50 = vpop.eup %1909  ;;  %922 = vperm.xlu1 %1842, %v1892_v30   ;;  %v412_v51 = vadd.f32 1.0, %v1908_v49  ;;  %1935 = vpow2.f32 %v1775_v45  ;;  %v50_v30 = vld [vmem:[%s3797_s0 + $0x138] sm:$0xff]  ;;  %v53_v45 = vld [vmem:[%s3797_s0 + $0x150] sm:$0xff] }
  0x33   :  { %v1912_v52 = vpop.eup %1911  ;;  %917 = vperm.xlu0 %1841, %v1894_v33   ;;  %v411_v53 = vadd.f32 1.0, %v1910_v50  ;;  %1937 = vpow2.f32 %v1774_v47  ;;  %v49_v33 = vld [vmem:[%s3797_s0 + $0x130] sm:$0xff]  ;;  %v1783_v38 = vmul.f32 -1.442695, %v50_v30 }
  0x34   :  { %v1914_v54 = vpop.eup %1913  ;;  %1939 = vrcp.f32 %v412_v51  ;;  %v414_v55 = vadd.f32 1.0, %v1912_v52  ;;  %v1782_v41 = vmul.f32 -1.442695, %v49_v33  ;;  %v55_v51 = vld [vmem:[%s3797_s0 + $0x160] sm:$0xff] }
  0x35   :  { %v1916_v56 = vpop.eup %1915  ;;  %1941 = vrcp.f32 %v411_v53  ;;  %v413_v57 = vadd.f32 1.0, %v1914_v54  ;;  %v1786_v53 = vmul.f32 -1.442695, %v53_v45  ;;  %v58_v54 = vld [vmem:[%s3797_s0 + $0x178] sm:$0xff] }
  0x36   :  { %v1918_v58 = vpop.eup %1917  ;;  %932 = vperm.xlu1 %1842, %v1896_v36   ;;  %1943 = vrcp.f32 %v414_v55  ;;  %v416_v59 = vadd.f32 1.0, %v1916_v56  ;;  %v52_v36 = vld [vmem:[%s3797_s0 + $0x148] sm:$0xff] }
  0x37   :  { %v1920_v60 = vpop.eup %1919  ;;  %927 = vperm.xlu0 %1841, %v1898_v39   ;;  %1945 = vrcp.f32 %v413_v57  ;;  %v415_v61 = vadd.f32 1.0, %v1918_v58  ;;  %v51_v39 = vld [vmem:[%s3797_s0 + $0x140] sm:$0xff]  ;;  %v57_v57 = vld [vmem:[%s3797_s0 + $0x170] sm:$0xff] }
  0x38   :  { %v1922_v62 = vpop.eup %1921  ;;  %1947 = vrcp.f32 %v416_v59  ;;  %v418_v63 = vadd.f32 1.0, %v1920_v60  ;;  %v1784_v47 = vmul.f32 -1.442695, %v51_v39  ;;  %v1788_v59 = vmul.f32 -1.442695, %v55_v51 }
  0x39   :  { %v1924_v0 = vpop.eup %1923  ;;  %1949 = vrcp.f32 %v415_v61  ;;  %v417_v1 = vadd.f32 1.0, %v1922_v62  ;;  %v1791_v61 = vmul.f32 -1.442695, %v58_v54 }
  0x3a   :  { %v1926_v2 = vpop.eup %1925  ;;  %942 = vperm.xlu1 %1842, %v1900_v42   ;;  %1951 = vrcp.f32 %v418_v63  ;;  %v420_v3 = vadd.f32 1.0, %v1924_v0  ;;  %v54_v42 = vld [vmem:[%s3797_s0 + $0x158] sm:$0xff]  ;;  %v1790_v63 = vmul.f32 -1.442695, %v57_v57 }
  0x3b   :  { %v1928_v4 = vpop.eup %1927  ;;  %937 = vperm.xlu0 %1841, %v1902_v44   ;;  %1953 = vrcp.f32 %v417_v1  ;;  %v419_v5 = vadd.f32 1.0, %v1926_v2  ;;  %v1785_v44 = vmul.f32 -1.442695, %v52_v36  ;;  %v1787_v50 = vmul.f32 -1.442695, %v54_v42  ;;  %v61_v36 = vld [vmem:[%s3797_s0 + $0x190] sm:$0xff] }
  0x3c   :  { %v1930_v6 = vpop.eup %1929  ;;  %1955 = vrcp.f32 %v420_v3  ;;  %v422_v7 = vadd.f32 1.0, %v1928_v4  ;;  %v1794_v45 = vmul.f32 -1.442695, %v61_v36 }
  0x3d   :  { %v1932_v8 = vpop.eup %1931  ;;  %1957 = vrcp.f32 %v419_v5  ;;  %v421_v9 = vadd.f32 1.0, %v1930_v6 }
  0x3e   :  { %v1934_v11 = vpop.eup %1933  ;;  %952 = vperm.xlu1 %1842, %v1904_v46   ;;  %1959 = vrcp.f32 %v422_v7  ;;  %v424_v12 = vadd.f32 1.0, %v1932_v8 }
  0x3f   :  { %v1936_v14 = vpop.eup %1935  ;;  %947 = vperm.xlu0 %1841, %v1906_v48   ;;  %1961 = vrcp.f32 %v421_v9  ;;  %v423_v15 = vadd.f32 1.0, %v1934_v11  ;;  %v56_v48 = vld [vmem:[%s3797_s0 + $0x168] sm:$0xff] }
  0x40   :  { %v1938_v17 = vpop.eup %1937  ;;  %1963 = vrcp.f32 %v424_v12  ;;  %v426_v18 = vadd.f32 1.0, %v1936_v14  ;;  %v1789_v56 = vmul.f32 -1.442695, %v56_v48 }
  0x41   :  { %v1940_v21 = vpop.eup %1939  ;;  %1965 = vrcp.f32 %v423_v15  ;;  %v425_v22 = vadd.f32 1.0, %v1938_v17 }
  0x42   :  { %v1942_v25 = vpop.eup %1941  ;;  %962 = vperm.xlu1 %1842, %v1940_v21   ;;  %1967 = vrcp.f32 %v426_v18 }
  0x43   :  { %v1944_v28 = vpop.eup %1943  ;;  %957 = vperm.xlu0 %1841, %v1942_v25   ;;  %1969 = vrcp.f32 %v425_v22 }
  0x44   :  { %v1946_v31 = vpop.eup %1945  ;;  %1971 = vpow2.f32 %v1777_v19 }
  0x45   :  { %v1948_v34 = vpop.eup %1947  ;;  %1973 = vpow2.f32 %v1776_v23 }
  0x46   :  { %v1950_v37 = vpop.eup %1949  ;;  %972 = vperm.xlu1 %1842, %v1944_v28   ;;  %1975 = vpow2.f32 %v1779_v26  ;;  %v60_v26 = vld [vmem:[%s3797_s0 + $0x188] sm:$0xff] }
  0x47   :  { %v1952_v40 = vpop.eup %1951  ;;  %967 = vperm.xlu0 %1841, %v1946_v31   ;;  %1977 = vpow2.f32 %v1778_v29  ;;  %v59_v29 = vld [vmem:[%s3797_s0 + $0x180] sm:$0xff] }
  0x48   :  { %v1954_v43 = vpop.eup %1953  ;;  %1979 = vpow2.f32 %v1781_v32  ;;  %v62_v32 = vld [vmem:[%s3797_s0 + $0x198] sm:$0xff]  ;;  %v1792_v39 = vmul.f32 -1.442695, %v59_v29 }
  0x49   :  { %v1956_v46 = vpop.eup %1955  ;;  %1981 = vpow2.f32 %v1780_v35  ;;  %v1793_v35 = vmul.f32 -1.442695, %v60_v26  ;;  %v1795_v42 = vmul.f32 -1.442695, %v62_v32 }
  0x4a   :  { %v1958_v49 = vpop.eup %1957  ;;  %982 = vperm.xlu1 %1842, %v1948_v34   ;;  %1983 = vpow2.f32 %v1783_v38 }
  0x4b   :  { %v1960_v52 = vpop.eup %1959  ;;  %977 = vperm.xlu0 %1841, %v1950_v37   ;;  %1985 = vpow2.f32 %v1782_v41 }
  0x4c   :  { %v1962_v55 = vpop.eup %1961  ;;  %1987 = vpow2.f32 %v1785_v44 }
  0x4d   :  { %v1964_v58 = vpop.eup %1963  ;;  %1989 = vpow2.f32 %v1784_v47 }
  0x4e   :  { %v1966_v60 = vpop.eup %1965  ;;  %992 = vperm.xlu1 %1842, %v1952_v40   ;;  %1991 = vpow2.f32 %v1787_v50  ;;  %v64_v40 = vld [vmem:[%s3797_s0 + $0x1a8] sm:$0xff] }
  0x4f   :  { %v1968_v62 = vpop.eup %1967  ;;  %987 = vperm.xlu0 %1841, %v1954_v43   ;;  %1993 = vpow2.f32 %v1786_v53  ;;  %v63_v43 = vld [vmem:[%s3797_s0 + $0x1a0] sm:$0xff]  ;;  %v1797_v48 = vmul.f32 -1.442695, %v64_v40 }
  0x50   :  { %v1970_v0 = vpop.eup %1969  ;;  %1995 = vpow2.f32 %v1789_v56  ;;  %v1796_v51 = vmul.f32 -1.442695, %v63_v43 }
  0x51   :  { %v1972_v1 = vpop.eup %1971  ;;  %1997 = vpow2.f32 %v1788_v59 }
  0x52   :  { %v1974_v2 = vpop.eup %1973  ;;  %1002 = vperm.xlu1 %1842, %v1956_v46   ;;  %v428_v3 = vadd.f32 1.0, %v1972_v1  ;;  %1999 = vpow2.f32 %v1791_v61  ;;  %v66_v46 = vld [vmem:[%s3797_s0 + $0x1b8] sm:$0xff]  ;;  %v69_v61 = vld [vmem:[%s3797_s0 + $0x1d0] sm:$0xff] }
  0x53   :  { %v1976_v4 = vpop.eup %1975  ;;  %997 = vperm.xlu0 %1841, %v1958_v49   ;;  %v427_v5 = vadd.f32 1.0, %v1974_v2  ;;  %2001 = vpow2.f32 %v1790_v63  ;;  %v65_v49 = vld [vmem:[%s3797_s0 + $0x1b0] sm:$0xff]  ;;  %v1799_v54 = vmul.f32 -1.442695, %v66_v46 }
  0x54   :  { %v1978_v6 = vpop.eup %1977  ;;  %2003 = vrcp.f32 %v428_v3  ;;  %v430_v7 = vadd.f32 1.0, %v1976_v4  ;;  %v1798_v57 = vmul.f32 -1.442695, %v65_v49  ;;  %v71_v3 = vld [vmem:[%s3797_s0 + $0x1e0] sm:$0xff] }
  0x55   :  { %v1980_v8 = vpop.eup %1979  ;;  %2005 = vrcp.f32 %v427_v5  ;;  %v429_v9 = vadd.f32 1.0, %v1978_v6  ;;  %v1802_v5 = vmul.f32 -1.442695, %v69_v61  ;;  %v74_v6 = vld [vmem:[%s3797_s0 + $0x1f8] sm:$0xff] }
  0x56   :  { %v1982_v10 = vpop.eup %1981  ;;  %1012 = vperm.xlu1 %1842, %v1960_v52   ;;  %2007 = vrcp.f32 %v430_v7  ;;  %v432_v11 = vadd.f32 1.0, %v1980_v8  ;;  %v68_v52 = vld [vmem:[%s3797_s0 + $0x1c8] sm:$0xff] }
  0x57   :  { %v1984_v12 = vpop.eup %1983  ;;  %1007 = vperm.xlu0 %1841, %v1962_v55   ;;  %2009 = vrcp.f32 %v429_v9  ;;  %v431_v13 = vadd.f32 1.0, %v1982_v10  ;;  %v67_v55 = vld [vmem:[%s3797_s0 + $0x1c0] sm:$0xff]  ;;  %v73_v9 = vld [vmem:[%s3797_s0 + $0x1f0] sm:$0xff] }
  0x58   :  { %v1986_v14 = vpop.eup %1985  ;;  %2011 = vrcp.f32 %v432_v11  ;;  %v434_v15 = vadd.f32 1.0, %v1984_v12  ;;  %v1800_v63 = vmul.f32 -1.442695, %v67_v55  ;;  %v1804_v11 = vmul.f32 -1.442695, %v71_v3 }
  0x59   :  { %v1988_v16 = vpop.eup %1987  ;;  %2013 = vrcp.f32 %v431_v13  ;;  %v433_v17 = vadd.f32 1.0, %v1986_v14  ;;  %v1807_v13 = vmul.f32 -1.442695, %v74_v6 }
  0x5a   :  { %v1990_v18 = vpop.eup %1989  ;;  %1022 = vperm.xlu1 %1842, %v1964_v58   ;;  %2015 = vrcp.f32 %v434_v15  ;;  %v436_v19 = vadd.f32 1.0, %v1988_v16  ;;  %v70_v58 = vld [vmem:[%s3797_s0 + $0x1d8] sm:$0xff]  ;;  %v1806_v15 = vmul.f32 -1.442695, %v73_v9 }
  0x5b   :  { %v1992_v20 = vpop.eup %1991  ;;  %1017 = vperm.xlu0 %1841, %v1966_v60   ;;  %2017 = vrcp.f32 %v433_v17  ;;  %v435_v21 = vadd.f32 1.0, %v1990_v18  ;;  %v1801_v60 = vmul.f32 -1.442695, %v68_v52  ;;  %v1803_v2 = vmul.f32 -1.442695, %v70_v58  ;;  %v77_v52 = vld [vmem:[%s3797_s0 + $0x210] sm:$0xff] }
  0x5c   :  { %v1994_v22 = vpop.eup %1993  ;;  %2019 = vrcp.f32 %v436_v19  ;;  %v438_v23 = vadd.f32 1.0, %v1992_v20  ;;  %v1810_v61 = vmul.f32 -1.442695, %v77_v52 }
  0x5d   :  { %v1996_v24 = vpop.eup %1995  ;;  %2021 = vrcp.f32 %v435_v21  ;;  %v437_v25 = vadd.f32 1.0, %v1994_v22 }
  0x5e   :  { %v1998_v27 = vpop.eup %1997  ;;  %1032 = vperm.xlu1 %1842, %v1968_v62   ;;  %2023 = vrcp.f32 %v438_v23  ;;  %v440_v28 = vadd.f32 1.0, %v1996_v24 }
  0x5f   :  { %v2000_v30 = vpop.eup %1999  ;;  %1027 = vperm.xlu0 %1841, %v1970_v0   ;;  %2025 = vrcp.f32 %v437_v25  ;;  %v439_v31 = vadd.f32 1.0, %v1998_v27  ;;  %v72_v0 = vld [vmem:[%s3797_s0 + $0x1e8] sm:$0xff] }
  0x60   :  { %v2002_v33 = vpop.eup %2001  ;;  %2027 = vrcp.f32 %v440_v28  ;;  %v442_v34 = vadd.f32 1.0, %v2000_v30  ;;  %v1805_v8 = vmul.f32 -1.442695, %v72_v0 }
  0x61   :  { %v2004_v37 = vpop.eup %2003  ;;  %2029 = vrcp.f32 %v439_v31  ;;  %v441_v38 = vadd.f32 1.0, %v2002_v33 }
  0x62   :  { %v2006_v41 = vpop.eup %2005  ;;  %1042 = vperm.xlu1 %1842, %v2004_v37   ;;  %2031 = vrcp.f32 %v442_v34 }
  0x63   :  { %v2008_v44 = vpop.eup %2007  ;;  %1037 = vperm.xlu0 %1841, %v2006_v41   ;;  %2033 = vrcp.f32 %v441_v38 }
  0x64   :  { %v2010_v47 = vpop.eup %2009  ;;  %2035 = vpow2.f32 %v1793_v35 }
  0x65   :  { %v2012_v50 = vpop.eup %2011  ;;  %2037 = vpow2.f32 %v1792_v39 }
  0x66   :  { %v2014_v53 = vpop.eup %2013  ;;  %1052 = vperm.xlu1 %1842, %v2008_v44   ;;  %2039 = vpow2.f32 %v1795_v42  ;;  %v76_v42 = vld [vmem:[%s3797_s0 + $0x208] sm:$0xff] }
  0x67   :  { %v2016_v56 = vpop.eup %2015  ;;  %1047 = vperm.xlu0 %1841, %v2010_v47   ;;  %2041 = vpow2.f32 %v1794_v45  ;;  %v75_v45 = vld [vmem:[%s3797_s0 + $0x200] sm:$0xff] }
  0x68   :  { %v2018_v59 = vpop.eup %2017  ;;  %2043 = vpow2.f32 %v1797_v48  ;;  %v78_v48 = vld [vmem:[%s3797_s0 + $0x218] sm:$0xff]  ;;  %v1808_v55 = vmul.f32 -1.442695, %v75_v45 }
  0x69   :  { %v2020_v62 = vpop.eup %2019  ;;  %2045 = vpow2.f32 %v1796_v51  ;;  %v1809_v51 = vmul.f32 -1.442695, %v76_v42  ;;  %v1811_v58 = vmul.f32 -1.442695, %v78_v48 }
  0x6a   :  { %v2022_v1 = vpop.eup %2021  ;;  %1062 = vperm.xlu1 %1842, %v2012_v50   ;;  %2047 = vpow2.f32 %v1799_v54 }
  0x6b   :  { %v2024_v4 = vpop.eup %2023  ;;  %1057 = vperm.xlu0 %1841, %v2014_v53   ;;  %2049 = vpow2.f32 %v1798_v57 }
  0x6c   :  { %v2026_v7 = vpop.eup %2025  ;;  %2051 = vpow2.f32 %v1801_v60 }
  0x6d   :  { %v2028_v10 = vpop.eup %2027  ;;  %2053 = vpow2.f32 %v1800_v63 }
  0x6e   :  { %v2030_v12 = vpop.eup %2029  ;;  %1072 = vperm.xlu1 %1842, %v2016_v56   ;;  %2055 = vpow2.f32 %v1803_v2  ;;  %v80_v56 = vld [vmem:[%s3797_s0 + $0x228] sm:$0xff] }
  0x6f   :  { %v2032_v14 = vpop.eup %2031  ;;  %1067 = vperm.xlu0 %1841, %v2018_v59   ;;  %2057 = vpow2.f32 %v1802_v5  ;;  %v79_v59 = vld [vmem:[%s3797_s0 + $0x220] sm:$0xff]  ;;  %v1813_v0 = vmul.f32 -1.442695, %v80_v56 }
  0x70   :  { %v2034_v16 = vpop.eup %2033  ;;  %2059 = vpow2.f32 %v1805_v8  ;;  %v1812_v3 = vmul.f32 -1.442695, %v79_v59 }
  0x71   :  { %v2036_v17 = vpop.eup %2035  ;;  %2061 = vpow2.f32 %v1804_v11 }
  0x72   :  { %v2038_v18 = vpop.eup %2037  ;;  %1082 = vperm.xlu1 %1842, %v2020_v62   ;;  %v444_v19 = vadd.f32 1.0, %v2036_v17  ;;  %2063 = vpow2.f32 %v1807_v13  ;;  %v82_v62 = vld [vmem:[%s3797_s0 + $0x238] sm:$0xff]  ;;  %v85_v13 = vld [vmem:[%s3797_s0 + $0x250] sm:$0xff] }
  0x73   :  { %v2040_v20 = vpop.eup %2039  ;;  %1077 = vperm.xlu0 %1841, %v2022_v1   ;;  %v443_v21 = vadd.f32 1.0, %v2038_v18  ;;  %2065 = vpow2.f32 %v1806_v15  ;;  %v81_v1 = vld [vmem:[%s3797_s0 + $0x230] sm:$0xff]  ;;  %v1815_v6 = vmul.f32 -1.442695, %v82_v62 }
  0x74   :  { %v2042_v22 = vpop.eup %2041  ;;  %2067 = vrcp.f32 %v444_v19  ;;  %v446_v23 = vadd.f32 1.0, %v2040_v20  ;;  %v1814_v9 = vmul.f32 -1.442695, %v81_v1  ;;  %v87_v19 = vld [vmem:[%s3797_s0 + $0x260] sm:$0xff] }
  0x75   :  { %v2044_v24 = vpop.eup %2043  ;;  %2069 = vrcp.f32 %v443_v21  ;;  %v445_v25 = vadd.f32 1.0, %v2042_v22  ;;  %v1818_v21 = vmul.f32 -1.442695, %v85_v13  ;;  %v686_v13 = vld [vmem:[%s3798_s1 + $0x18] sm:$0xff] }
  0x76   :  { %v2046_v26 = vpop.eup %2045  ;;  %1092 = vperm.xlu1 %1842, %v2024_v4   ;;  %2071 = vrcp.f32 %v446_v23  ;;  %v448_v27 = vadd.f32 1.0, %v2044_v24  ;;  %v84_v4 = vld [vmem:[%s3797_s0 + $0x248] sm:$0xff] }
  0x77   :  { %v2048_v28 = vpop.eup %2047  ;;  %1087 = vperm.xlu0 %1841, %v2026_v7   ;;  %2073 = vrcp.f32 %v445_v25  ;;  %v447_v29 = vadd.f32 1.0, %v2046_v26  ;;  %v83_v7 = vld [vmem:[%s3797_s0 + $0x240] sm:$0xff]  ;;  %v1820_v25 = vmul.f32 -1.442695, %v87_v19  ;;  %v96_v19 = vld [vmem:[%s3797_s0 + $0x2a8] sm:$0xff] }
  0x78   :  { %v2050_v30 = vpop.eup %2049  ;;  %2075 = vrcp.f32 %v448_v27  ;;  %v450_v31 = vadd.f32 1.0, %v2048_v28  ;;  %v1816_v15 = vmul.f32 -1.442695, %v83_v7 }
  0x79   :  { %v2052_v32 = vpop.eup %2051  ;;  %2077 = vrcp.f32 %v447_v29  ;;  %v449_v33 = vadd.f32 1.0, %v2050_v30  ;;  %v90_v30 = vld [vmem:[%s3797_s0 + $0x278] sm:$0xff] }
  0x7a   :  { %v2054_v34 = vpop.eup %2053  ;;  %1102 = vperm.xlu1 %1842, %v2028_v10   ;;  %2079 = vrcp.f32 %v450_v31  ;;  %v452_v35 = vadd.f32 1.0, %v2052_v32  ;;  %v86_v10 = vld [vmem:[%s3797_s0 + $0x258] sm:$0xff] }
  0x7b   :  { %v2056_v36 = vpop.eup %2055  ;;  %1097 = vperm.xlu0 %1841, %v2030_v12   ;;  %2081 = vrcp.f32 %v449_v33  ;;  %v451_v37 = vadd.f32 1.0, %v2054_v34  ;;  %v1817_v12 = vmul.f32 -1.442695, %v84_v4  ;;  %v1819_v18 = vmul.f32 -1.442695, %v86_v10  ;;  %v89_v33 = vld [vmem:[%s3797_s0 + $0x270] sm:$0xff] }
  0x7c   :  { %v2058_v38 = vpop.eup %2057  ;;  %2083 = vrcp.f32 %v452_v35  ;;  %v454_v39 = vadd.f32 1.0, %v2056_v36 }
  0x7d   :  { %v2060_v40 = vpop.eup %2059  ;;  %2085 = vrcp.f32 %v451_v37  ;;  %v453_v41 = vadd.f32 1.0, %v2058_v38  ;;  %v1823_v38 = vmul.f32 -1.442695, %v90_v30  ;;  %v694_v30 = vld [vmem:[%s3798_s1 + $0x58] sm:$0xff] }
  0x7e   :  { %v2062_v43 = vpop.eup %2061  ;;  %1112 = vperm.xlu1 %1842, %v2032_v14   ;;  %2087 = vrcp.f32 %v454_v39  ;;  %v456_v44 = vadd.f32 1.0, %v2060_v40 }
  0x7f   :  { %v2064_v46 = vpop.eup %2063  ;;  %1107 = vperm.xlu0 %1841, %v2034_v16   ;;  %2089 = vrcp.f32 %v453_v41  ;;  %v455_v47 = vadd.f32 1.0, %v2062_v43  ;;  %v88_v16 = vld [vmem:[%s3797_s0 + $0x268] sm:$0xff]  ;;  %v1822_v41 = vmul.f32 -1.442695, %v89_v33 }
  0x80   :  { %v2066_v49 = vpop.eup %2065  ;;  %2091 = vrcp.f32 %v456_v44  ;;  %v458_v50 = vadd.f32 1.0, %v2064_v46  ;;  %v1821_v23 = vmul.f32 -1.442695, %v88_v16 }
  0x81   :  { %v2068_v53 = vpop.eup %2067  ;;  %2093 = vrcp.f32 %v455_v47  ;;  %v457_v54 = vadd.f32 1.0, %v2066_v49 }
  0x82   :  { %v2070_v57 = vpop.eup %2069  ;;  %1122 = vperm.xlu1 %1842, %v2068_v53   ;;  %2095 = vrcp.f32 %v458_v50  ;;  %v687_v53 = vld [vmem:[%s3798_s1 + $0x20] sm:$0xff] }
  0x83   :  { %v2072_v60 = vpop.eup %2071  ;;  %1117 = vperm.xlu0 %1841, %v2070_v57   ;;  %2097 = vrcp.f32 %v457_v54  ;;  %v688_v54 = vld [vmem:[%s3798_s1 + $0x28] sm:$0xff]  ;;  %v683_v57 = vld [vmem:[%s3798_s1] sm:$0xff] }
  0x84   :  { %v2074_v63 = vpop.eup %2073  ;;  %2099 = vpow2.f32 %v1809_v51 }
  0x85   :  { %v2076_v2 = vpop.eup %2075  ;;  %2101 = vpow2.f32 %v1808_v55 }
  0x86   :  { %v2078_v5 = vpop.eup %2077  ;;  %1132 = vperm.xlu1 %1842, %v2072_v60   ;;  %2103 = vpow2.f32 %v1811_v58  ;;  %v684_v58 = vld [vmem:[%s3798_s1 + $0x8] sm:$0xff] }
  0x87   :  { %v2080_v8 = vpop.eup %2079  ;;  %1127 = vperm.xlu0 %1841, %v2074_v63   ;;  %2105 = vpow2.f32 %v1810_v61  ;;  %v92_v63 = vld [vmem:[%s3797_s0 + $0x288] sm:$0xff] }
  0x88   :  { %v2082_v11 = vpop.eup %2081  ;;  %2107 = vpow2.f32 %v1813_v0 }
  0x89   :  { %v2084_v14 = vpop.eup %2083  ;;  %2109 = vpow2.f32 %v1812_v3 }
  0x8a   :  { %v2086_v17 = vpop.eup %2085  ;;  %1142 = vperm.xlu1 %1842, %v2076_v2   ;;  %2111 = vpow2.f32 %v1815_v6 }
  0x8b   :  { %v2088_v20 = vpop.eup %2087  ;;  %1137 = vperm.xlu0 %1841, %v2078_v5   ;;  %2113 = vpow2.f32 %v1814_v9  ;;  %v91_v5 = vld [vmem:[%s3797_s0 + $0x280] sm:$0xff]  ;;  %v690_v9 = vld [vmem:[%s3798_s1 + $0x38] sm:$0xff] }
  0x8c   :  { %v2090_v22 = vpop.eup %2089  ;;  %2115 = vpow2.f32 %v1817_v12  ;;  %v685_v12 = vld [vmem:[%s3798_s1 + $0x10] sm:$0xff] }
  0x8d   :  { %v2092_v24 = vpop.eup %2091  ;;  %2117 = vpow2.f32 %v1816_v15  ;;  %v93_v15 = vld [vmem:[%s3797_s0 + $0x290] sm:$0xff] }
  0x8e   :  { %v2094_v26 = vpop.eup %2093  ;;  %1152 = vperm.xlu1 %1842, %v2080_v8   ;;  %2119 = vpow2.f32 %v1819_v18  ;;  %v689_v8 = vld [vmem:[%s3798_s1 + $0x30] sm:$0xff]  ;;  %v1824_v18 = vmul.f32 -1.442695, %v91_v5 }
  0x8f   :  { %v2477_v27 = vpop.eup %2095  ;;  %1147 = vperm.xlu0 %1841, %v2082_v11   ;;  %2121 = vpow2.f32 %v1818_v21  ;;  %v94_v11 = vld [vmem:[%s3797_s0 + $0x298] sm:$0xff] }
  0x90   :  { %v2479_v28 = vpop.eup %2097  ;;  %2123 = vpow2.f32 %v1821_v23 }
  0x91   :  { %v2100_v29 = vpop.eup %2099  ;;  %2125 = vpow2.f32 %v1820_v25  ;;  %v95_v25 = vld [vmem:[%s3797_s0 + $0x2a0] sm:$0xff] }
  0x92   :  { %v2102_v31 = vpop.eup %2101  ;;  %1162 = vperm.xlu1 %1842, %v2084_v14   ;;  %v460_v32 = vadd.f32 1.0, %v2100_v29  ;;  %v1825_v14 = vmul.f32 -1.442695, %v92_v63  ;;  %v693_v29 = vld [vmem:[%s3798_s1 + $0x50] sm:$0xff] }
  0x93   :  { %v2104_v34 = vpop.eup %2103  ;;  %1157 = vperm.xlu0 %1841, %v2086_v17   ;;  %v459_v35 = vadd.f32 1.0, %v2102_v31  ;;  %v1826_v31 = vmul.f32 -1.442695, %v93_v15  ;;  %v103_v15 = vld [vmem:[%s3797_s0 + $0x2e0] sm:$0xff] }
  0x94   :  { %v2106_v36 = vpop.eup %2105  ;;  %2127 = vrcp.f32 %v460_v32  ;;  %v462_v37 = vadd.f32 1.0, %v2104_v34  ;;  %v98_v32 = vld [vmem:[%s3797_s0 + $0x2b8] sm:$0xff]  ;;  %v691_v34 = vld [vmem:[%s3798_s1 + $0x40] sm:$0xff] }
  0x95   :  { %v2108_v39 = vpop.eup %2107  ;;  %2129 = vrcp.f32 %v459_v35  ;;  %v461_v40 = vadd.f32 1.0, %v2106_v36  ;;  %v692_v35 = vld [vmem:[%s3798_s1 + $0x48] sm:$0xff]  ;;  %v1829_v36 = vmul.f32 -1.442695, %v96_v19 }
  0x96   :  { %v2110_v42 = vpop.eup %2109  ;;  %1172 = vperm.xlu1 %1842, %v2088_v20   ;;  %2131 = vrcp.f32 %v462_v37  ;;  %v464_v43 = vadd.f32 1.0, %v2108_v39  ;;  %v97_v37 = vld [vmem:[%s3797_s0 + $0x2b0] sm:$0xff] }
  0x97   :  { %v2112_v44 = vpop.eup %2111  ;;  %1167 = vperm.xlu0 %1841, %v2090_v22   ;;  %2133 = vrcp.f32 %v461_v40  ;;  %v463_v45 = vadd.f32 1.0, %v2110_v42  ;;  %v1828_v40 = vmul.f32 -1.442695, %v95_v25 }
  0x98   :  { %v2114_v46 = vpop.eup %2113  ;;  %v466_v47 = vadd.f32 1.0, %v2112_v44  ;;  %2135 = vpow2.f32 %v1823_v38 }
  0x99   :  { %v2116_v48 = vpop.eup %2115  ;;  %v465_v49 = vadd.f32 1.0, %v2114_v46  ;;  %2137 = vpow2.f32 %v1822_v41 }
  0x9a   :  { %v2118_v50 = vpop.eup %2117  ;;  %1182 = vperm.xlu1 %1842, %v2092_v24   ;;  %2139 = vrcp.f32 %v464_v43  ;;  %v468_v51 = vadd.f32 1.0, %v2116_v48  ;;  %v1827_v24 = vmul.f32 -1.442695, %v94_v11 }
  0x9b   :  { %v2120_v52 = vpop.eup %2119  ;;  %1177 = vperm.xlu0 %1841, %v2094_v26   ;;  %2141 = vrcp.f32 %v463_v45  ;;  %v467_v55 = vadd.f32 1.0, %v2118_v50  ;;  %v1831_v45 = vmul.f32 -1.442695, %v98_v32  ;;  %v698_v50 = vld [vmem:[%s3798_s1 + $0x78] sm:$0xff]  ;;  %v704_v32 = vld [vmem:[%s3798_s1 + $0xa8] sm:$0xff] }
  0x9c   :  { %v2122_v56 = vpop.eup %2121  ;;  %2143 = vrcp.f32 %v466_v47  ;;  %v470_v59 = vadd.f32 1.0, %v2120_v52  ;;  %v100_v52 = vld [vmem:[%s3797_s0 + $0x2c8] sm:$0xff] }
  0x9d   :  { %v2124_v60 = vpop.eup %2123  ;;  %v888_v61 = vpop.permute.xlu1 %887  ;;  %2145 = vrcp.f32 %v465_v49  ;;  %v469_v62 = vadd.f32 1.0, %v2122_v56  ;;  %v697_v49 = vld [vmem:[%s3798_s1 + $0x70] sm:$0xff] }
  0x9e   :  { %v2126_v0 = vpop.eup %2125  ;;  %v1359_v1 = vmul.f32 %v888_v61, %v687_v53  ;;  %v1360_v2 = vmul.f32 %v888_v61, %v688_v54  ;;  %v878_v3 = vpop.permute.xlu0 %877  ;;  %1192 = vperm.xlu1 %1842, %v2477_v27   ;;  %2147 = vrcp.f32 %v468_v51  ;;  %v472_v4 = vadd.f32 1.0, %v2124_v60  ;;  %v695_v54 = vld [vmem:[%s3798_s1 + $0x60] sm:$0xff]  ;;  %v102_v61 = vld [vmem:[%s3797_s0 + $0x2d8] sm:$0xff] }
  0x9f   :  { %v1355_v6 = vmul.f32 %v878_v3, %v683_v57  ;;  %v1356_v7 = vmul.f32 %v878_v3, %v684_v58  ;;  %1187 = vperm.xlu0 %1841, %v2479_v28   ;;  %2149 = vrcp.f32 %v467_v55  ;;  %v471_v10 = vadd.f32 1.0, %v2126_v0  ;;  %v696_v55 = vld [vmem:[%s3798_s1 + $0x68] sm:$0xff]  ;;  %v99_v57 = vld [vmem:[%s3797_s0 + $0x2c0] sm:$0xff]  ;;  %v101_v3 = vld [vmem:[%s3797_s0 + $0x2d0] sm:$0xff] }
  0xa0   :  { %1552 = vst [vmem:[%s3799_s2 + $0x20] sm:$0xff] %v1359_v1  ;;  %1553 = vst.msk [vmem:[%s3799_s2 + $0x28] sm:$0xff] %vm1548_vm0, %v1360_v2  ;;  %2151 = vrcp.f32 %v470_v59  ;;  %v1830_v51 = vmul.f32 -1.442695, %v97_v37  ;;  %v1833_v2 = vmul.f32 -1.442695, %v100_v52 }
  0xa1   :  { %v2128_v16 = vpop.eup %2127  ;;  %1547 = vst [vmem:[%s3799_s2] sm:$0xff] %v1355_v6  ;;  %1549 = vst.msk [vmem:[%s3799_s2 + $0x8] sm:$0xff] %vm1548_vm0, %v1356_v7  ;;  %v893_v17 = vpop.permute.xlu1 %892  ;;  %2153 = vrcp.f32 %v469_v62  ;;  %v701_v7 = vld [vmem:[%s3798_s1 + $0x90] sm:$0xff] }
  0xa2   :  { %v2130_v20 = vpop.eup %2129  ;;  %v1361_v21 = vmul.f32 %v893_v17, %v689_v8  ;;  %v1362_v22 = vmul.f32 %v893_v17, %v690_v9  ;;  %v883_v23 = vpop.permute.xlu0 %882  ;;  %1202 = vperm.xlu1 %1842, %v2128_v16   ;;  %2155 = vrcp.f32 %v472_v4  ;;  %v702_v8 = vld [vmem:[%s3798_s1 + $0x98] sm:$0xff]  ;;  %v1832_v9 = vmul.f32 -1.442695, %v99_v57 }
  0xa3   :  { %v2132_v26 = vpop.eup %2131  ;;  %v1357_v27 = vmul.f32 %v883_v23, %v685_v12  ;;  %v1358_v28 = vmul.f32 %v883_v23, %v686_v13  ;;  %1197 = vperm.xlu0 %1841, %v2130_v20   ;;  %2157 = vrcp.f32 %v471_v10  ;;  %v104_v10 = vld [vmem:[%s3797_s0 + $0x2e8] sm:$0xff]  ;;  %v699_v12 = vld [vmem:[%s3798_s1 + $0x80] sm:$0xff] }
  0xa4   :  { %v2134_v33 = vpop.eup %2133  ;;  %1554 = vst [vmem:[%s3799_s2 + $0x30] sm:$0xff] %v1361_v21  ;;  %1555 = vst.msk [vmem:[%s3799_s2 + $0x38] sm:$0xff] %vm1548_vm0, %v1362_v22  ;;  %2159 = vpow2.f32 %v1825_v14  ;;  %v700_v13 = vld [vmem:[%s3798_s1 + $0x88] sm:$0xff]  ;;  %v1835_v14 = vmul.f32 -1.442695, %v102_v61 }
  0xa5   :  { %v2136_v38 = vpop.eup %2135  ;;  %1550 = vst [vmem:[%s3799_s2 + $0x10] sm:$0xff] %v1357_v27  ;;  %1551 = vst.msk [vmem:[%s3799_s2 + $0x18] sm:$0xff] %vm1548_vm0, %v1358_v28  ;;  %v903_v39 = vpop.permute.xlu1 %902  ;;  %2161 = vpow2.f32 %v1824_v18  ;;  %v1834_v18 = vmul.f32 -1.442695, %v101_v3  ;;  %v1837_v23 = vmul.f32 -1.442695, %v104_v10 }
  0xa6   :  { %v2138_v41 = vpop.eup %2137  ;;  %v1365_v42 = vmul.f32 %v903_v39, %v693_v29  ;;  %v1366_v43 = vmul.f32 %v903_v39, %v694_v30  ;;  %v898_v44 = vpop.permute.xlu0 %897  ;;  %1212 = vperm.xlu1 %1842, %v2132_v26   ;;  %2163 = vpow2.f32 %v1827_v24  ;;  %v474_v56 = vadd.f32 1.0, %v2136_v38  ;;  %v705_v27 = vld [vmem:[%s3798_s1 + $0xb0] sm:$0xff]  ;;  %v706_v28 = vld [vmem:[%s3798_s1 + $0xb8] sm:$0xff] }
  0xa7   :  { %v2140_v46 = vpop.eup %2139  ;;  %v1363_v47 = vmul.f32 %v898_v44, %v691_v34  ;;  %v1364_v48 = vmul.f32 %v898_v44, %v692_v35  ;;  %1207 = vperm.xlu0 %1841, %v2134_v33   ;;  %2165 = vpow2.f32 %v1826_v31  ;;  %v473_v60 = vadd.f32 1.0, %v2138_v41  ;;  %v703_v31 = vld [vmem:[%s3798_s1 + $0xa0] sm:$0xff]  ;;  %v106_v35 = vld [vmem:[%s3797_s0 + $0x2f8] sm:$0xff]  ;;  %v105_v41 = vld [vmem:[%s3797_s0 + $0x2f0] sm:$0xff] }
  0xa8   :  { %v2142_v53 = vpop.eup %2141  ;;  %1558 = vst [vmem:[%s3799_s2 + $0x50] sm:$0xff] %v1365_v42  ;;  %1559 = vst.msk [vmem:[%s3799_s2 + $0x58] sm:$0xff] %vm1548_vm0, %v1366_v43  ;;  %2167 = vpow2.f32 %v1829_v36  ;;  %v1836_v29 = vmul.f32 -1.442695, %v103_v15  ;;  %v1839_v52 = vmul.f32 -1.442695, %v106_v35 }
  0xa9   :  { %v2144_v58 = vpop.eup %2143  ;;  %1556 = vst [vmem:[%s3799_s2 + $0x40] sm:$0xff] %v1363_v47  ;;  %1557 = vst.msk [vmem:[%s3799_s2 + $0x48] sm:$0xff] %vm1548_vm0, %v1364_v48  ;;  %v913_v59 = vpop.permute.xlu1 %912  ;;  %2169 = vpow2.f32 %v1828_v40 }
  0xaa   :  { %v2146_v62 = vpop.eup %2145  ;;  %v1369_v63 = vmul.f32 %v913_v59, %v697_v49  ;;  %v1370_v0 = vmul.f32 %v913_v59, %v698_v50  ;;  %v908_v1 = vpop.permute.xlu0 %907  ;;  %1222 = vperm.xlu1 %1842, %v2140_v46   ;;  %2171 = vpow2.f32 %v1831_v45  ;;  %v709_v45 = vld [vmem:[%s3798_s1 + $0xd0] sm:$0xff]  ;;  %v710_v46 = vld [vmem:[%s3798_s1 + $0xd8] sm:$0xff]  ;;  %v707_v49 = vld [vmem:[%s3798_s1 + $0xc0] sm:$0xff] }
  0xab   :  { %v2148_v4 = vpop.eup %2147  ;;  %v1367_v5 = vmul.f32 %v908_v1, %v695_v54  ;;  %v1368_v6 = vmul.f32 %v908_v1, %v696_v55  ;;  %1217 = vperm.xlu0 %1841, %v2142_v53   ;;  %2173 = vpow2.f32 %v1830_v51  ;;  %v708_v50 = vld [vmem:[%s3798_s1 + $0xc8] sm:$0xff]  ;;  %v713_v1 = vld [vmem:[%s3798_s1 + $0xf0] sm:$0xff] }
  0xac   :  { %v2150_v11 = vpop.eup %2149  ;;  %1562 = vst [vmem:[%s3799_s2 + $0x70] sm:$0xff] %v1369_v63  ;;  %1563 = vst.msk [vmem:[%s3799_s2 + $0x78] sm:$0xff] %vm1548_vm0, %v1370_v0  ;;  %2175 = vrcp.f32 %v474_v56  ;;  %v1838_v56 = vmul.f32 -1.442695, %v105_v41 }
  0xad   :  { %v2640_v16 = vpop.eup %2151  ;;  %1560 = vst [vmem:[%s3799_s2 + $0x60] sm:$0xff] %v1367_v5  ;;  %1561 = vst.msk [vmem:[%s3799_s2 + $0x68] sm:$0xff] %vm1548_vm0, %v1368_v6  ;;  %v923_v17 = vpop.permute.xlu1 %922  ;;  %2177 = vrcp.f32 %v473_v60  ;;  %v711_v5 = vld [vmem:[%s3798_s1 + $0xe0] sm:$0xff]  ;;  %v712_v6 = vld [vmem:[%s3798_s1 + $0xe8] sm:$0xff] }
  0xae   :  { %v2649_v19 = vpop.eup %2153  ;;  %v1373_v20 = vmul.f32 %v923_v17, %v701_v7  ;;  %v1374_v21 = vmul.f32 %v923_v17, %v702_v8  ;;  %v918_v22 = vpop.permute.xlu0 %917  ;;  %1232 = vperm.xlu1 %1842, %v2144_v58   ;;  %2179 = vpow2.f32 %v1833_v2  ;;  %v714_v2 = vld [vmem:[%s3798_s1 + $0xf8] sm:$0xff]  ;;  %v717_v17 = vld [vmem:[%s3798_s1 + $0x110] sm:$0xff] }
  0xaf   :  { %v2651_v24 = vpop.eup %2155  ;;  %v1371_v25 = vmul.f32 %v918_v22, %v699_v12  ;;  %v1372_v26 = vmul.f32 %v918_v22, %v700_v13  ;;  %1227 = vperm.xlu0 %1841, %v2146_v62   ;;  %2181 = vpow2.f32 %v1832_v9  ;;  %v716_v22 = vld [vmem:[%s3798_s1 + $0x108] sm:$0xff] }
  0xb0   :  { %v2659_v30 = vpop.eup %2157  ;;  %1566 = vst [vmem:[%s3799_s2 + $0x90] sm:$0xff] %v1373_v20  ;;  %1567 = vst.msk [vmem:[%s3799_s2 + $0x98] sm:$0xff] %vm1548_vm0, %v1374_v21  ;;  %2183 = vpow2.f32 %v1835_v14  ;;  %v715_v21 = vld [vmem:[%s3798_s1 + $0x100] sm:$0xff] }
  0xb1   :  { %v2160_v33 = vpop.eup %2159  ;;  %1564 = vst [vmem:[%s3799_s2 + $0x80] sm:$0xff] %v1371_v25  ;;  %1565 = vst.msk [vmem:[%s3799_s2 + $0x88] sm:$0xff] %vm1548_vm0, %v1372_v26  ;;  %v933_v34 = vpop.permute.xlu1 %932  ;;  %2185 = vpow2.f32 %v1834_v18  ;;  %v718_v18 = vld [vmem:[%s3798_s1 + $0x118] sm:$0xff] }
  0xb2   :  { %v2162_v36 = vpop.eup %2161  ;;  %v1377_v37 = vmul.f32 %v933_v34, %v705_v27  ;;  %v1378_v38 = vmul.f32 %v933_v34, %v706_v28  ;;  %v928_v39 = vpop.permute.xlu0 %927  ;;  %1242 = vperm.xlu1 %1842, %v2148_v4   ;;  %v476_v40 = vadd.f32 1.0, %v2160_v33  ;;  %2187 = vpow2.f32 %v1837_v23  ;;  %v721_v33 = vld [vmem:[%s3798_s1 + $0x130] sm:$0xff]  ;;  %v722_v34 = vld [vmem:[%s3798_s1 + $0x138] sm:$0xff] }
  0xb3   :  { %v2164_v42 = vpop.eup %2163  ;;  %v1375_v43 = vmul.f32 %v928_v39, %v703_v31  ;;  %v1376_v44 = vmul.f32 %v928_v39, %v704_v32  ;;  %1237 = vperm.xlu0 %1841, %v2150_v11   ;;  %v475_v47 = vadd.f32 1.0, %v2162_v36  ;;  %2189 = vpow2.f32 %v1836_v29 }
  0xb4   :  { %v2166_v48 = vpop.eup %2165  ;;  %1570 = vst [vmem:[%s3799_s2 + $0xb0] sm:$0xff] %v1377_v37  ;;  %1571 = vst.msk [vmem:[%s3799_s2 + $0xb8] sm:$0xff] %vm1548_vm0, %v1378_v38  ;;  %2191 = vrcp.f32 %v476_v40  ;;  %v478_v51 = vadd.f32 1.0, %v2164_v42  ;;  %v719_v37 = vld [vmem:[%s3798_s1 + $0x120] sm:$0xff]  ;;  %v720_v38 = vld [vmem:[%s3798_s1 + $0x128] sm:$0xff] }
  0xb5   :  { %v2168_v53 = vpop.eup %2167  ;;  %1568 = vst [vmem:[%s3799_s2 + $0xa0] sm:$0xff] %v1375_v43  ;;  %1569 = vst.msk [vmem:[%s3799_s2 + $0xa8] sm:$0xff] %vm1548_vm0, %v1376_v44  ;;  %v943_v54 = vpop.permute.xlu1 %942  ;;  %2193 = vrcp.f32 %v475_v47  ;;  %v477_v55 = vadd.f32 1.0, %v2166_v48 }
  0xb6   :  { %v2170_v57 = vpop.eup %2169  ;;  %v1381_v58 = vmul.f32 %v943_v54, %v709_v45  ;;  %v1382_v59 = vmul.f32 %v943_v54, %v710_v46  ;;  %v938_v60 = vpop.permute.xlu0 %937  ;;  %1252 = vperm.xlu1 %1842, %v2640_v16   ;;  %2195 = vrcp.f32 %v478_v51  ;;  %v480_v61 = vadd.f32 1.0, %v2168_v53  ;;  %v723_v53 = vld [vmem:[%s3798_s1 + $0x140] sm:$0xff]  ;;  %v724_v54 = vld [vmem:[%s3798_s1 + $0x148] sm:$0xff] }
  0xb7   :  { %v2172_v62 = vpop.eup %2171  ;;  %v1379_v63 = vmul.f32 %v938_v60, %v707_v49  ;;  %v1380_v0 = vmul.f32 %v938_v60, %v708_v50  ;;  %1247 = vperm.xlu0 %1841, %v2649_v19   ;;  %2197 = vrcp.f32 %v477_v55  ;;  %v479_v3 = vadd.f32 1.0, %v2170_v57  ;;  %v725_v49 = vld [vmem:[%s3798_s1 + $0x150] sm:$0xff]  ;;  %v726_v50 = vld [vmem:[%s3798_s1 + $0x158] sm:$0xff] }
  0xb8   :  { %v2174_v4 = vpop.eup %2173  ;;  %1574 = vst [vmem:[%s3799_s2 + $0xd0] sm:$0xff] %v1381_v58  ;;  %1575 = vst.msk [vmem:[%s3799_s2 + $0xd8] sm:$0xff] %vm1548_vm0, %v1382_v59  ;;  %2199 = vpow2.f32 %v1839_v52  ;;  %v482_v13 = vadd.f32 1.0, %v2172_v62 }
  0xb9   :  { %v2176_v7 = vpop.eup %2175  ;;  %1572 = vst [vmem:[%s3799_s2 + $0xc0] sm:$0xff] %v1379_v63  ;;  %1573 = vst.msk [vmem:[%s3799_s2 + $0xc8] sm:$0xff] %vm1548_vm0, %v1380_v0  ;;  %v953_v8 = vpop.permute.xlu1 %952  ;;  %2201 = vpow2.f32 %v1838_v56  ;;  %v481_v19 = vadd.f32 1.0, %v2174_v4 }
  0xba   :  { %v2178_v9 = vpop.eup %2177  ;;  %v1385_v10 = vmul.f32 %v953_v8, %v713_v1  ;;  %v1386_v11 = vmul.f32 %v953_v8, %v714_v2  ;;  %v948_v12 = vpop.permute.xlu0 %947  ;;  %1262 = vperm.xlu1 %1842, %v2651_v24   ;;  %2203 = vrcp.f32 %v480_v61  ;;  %v729_v1 = vld [vmem:[%s3798_s1 + $0x170] sm:$0xff]  ;;  %v730_v2 = vld [vmem:[%s3798_s1 + $0x178] sm:$0xff] }
  0xbb   :  { %v2180_v14 = vpop.eup %2179  ;;  %v1383_v15 = vmul.f32 %v948_v12, %v711_v5  ;;  %v1384_v16 = vmul.f32 %v948_v12, %v712_v6  ;;  %1257 = vperm.xlu0 %1841, %v2659_v30   ;;  %2205 = vrcp.f32 %v479_v3  ;;  %v727_v5 = vld [vmem:[%s3798_s1 + $0x160] sm:$0xff]  ;;  %v728_v6 = vld [vmem:[%s3798_s1 + $0x168] sm:$0xff] }
  0xbc   :  { %v2182_v20 = vpop.eup %2181  ;;  %1578 = vst [vmem:[%s3799_s2 + $0xf0] sm:$0xff] %v1385_v10  ;;  %1579 = vst.msk [vmem:[%s3799_s2 + $0xf8] sm:$0xff] %vm1548_vm0, %v1386_v11  ;;  %2207 = vrcp.f32 %v482_v13  ;;  %v484_v29 = vadd.f32 1.0, %v2180_v14 }
  0xbd   :  { %v2184_v23 = vpop.eup %2183  ;;  %1576 = vst [vmem:[%s3799_s2 + $0xe0] sm:$0xff] %v1383_v15  ;;  %1577 = vst.msk [vmem:[%s3799_s2 + $0xe8] sm:$0xff] %vm1548_vm0, %v1384_v16  ;;  %v963_v24 = vpop.permute.xlu1 %962  ;;  %2209 = vrcp.f32 %v481_v19  ;;  %v483_v35 = vadd.f32 1.0, %v2182_v20  ;;  %v733_v15 = vld [vmem:[%s3798_s1 + $0x190] sm:$0xff]  ;;  %v734_v16 = vld [vmem:[%s3798_s1 + $0x198] sm:$0xff] }
  0xbe   :  { %v2186_v25 = vpop.eup %2185  ;;  %v1389_v26 = vmul.f32 %v963_v24, %v717_v17  ;;  %v1390_v27 = vmul.f32 %v963_v24, %v718_v18  ;;  %v958_v28 = vpop.permute.xlu0 %957  ;;  %1272 = vperm.xlu1 %1842, %v2176_v7   ;;  %2211 = vrcp.f32 %v484_v29  ;;  %v486_v45 = vadd.f32 1.0, %v2184_v23  ;;  %v731_v19 = vld [vmem:[%s3798_s1 + $0x180] sm:$0xff]  ;;  %v732_v20 = vld [vmem:[%s3798_s1 + $0x188] sm:$0xff]  ;;  %v738_v29 = vld [vmem:[%s3798_s1 + $0x1b8] sm:$0xff] }
  0xbf   :  { %v2188_v30 = vpop.eup %2187  ;;  %v1387_v31 = vmul.f32 %v958_v28, %v715_v21  ;;  %v1388_v32 = vmul.f32 %v958_v28, %v716_v22  ;;  %1267 = vperm.xlu0 %1841, %v2178_v9   ;;  %2213 = vrcp.f32 %v483_v35  ;;  %v485_v51 = vadd.f32 1.0, %v2186_v25  ;;  %v737_v28 = vld [vmem:[%s3798_s1 + $0x1b0] sm:$0xff] }
  0xc0   :  { %v2190_v36 = vpop.eup %2189  ;;  %1582 = vst [vmem:[%s3799_s2 + $0x110] sm:$0xff] %v1389_v26  ;;  %1583 = vst.msk [vmem:[%s3799_s2 + $0x118] sm:$0xff] %vm1548_vm0, %v1390_v27  ;;  %2215 = vrcp.f32 %v486_v45  ;;  %v488_v61 = vadd.f32 1.0, %v2188_v30 }
  0xc1   :  { %v2192_v39 = vpop.eup %2191  ;;  %1580 = vst [vmem:[%s3799_s2 + $0x100] sm:$0xff] %v1387_v31  ;;  %1581 = vst.msk [vmem:[%s3799_s2 + $0x108] sm:$0xff] %vm1548_vm0, %v1388_v32  ;;  %v973_v40 = vpop.permute.xlu1 %972  ;;  %2217 = vrcp.f32 %v485_v51  ;;  %v487_v3 = vadd.f32 1.0, %v2190_v36  ;;  %v735_v31 = vld [vmem:[%s3798_s1 + $0x1a0] sm:$0xff]  ;;  %v736_v32 = vld [vmem:[%s3798_s1 + $0x1a8] sm:$0xff] }
  0xc2   :  { %v2194_v41 = vpop.eup %2193  ;;  %v1393_v42 = vmul.f32 %v973_v40, %v721_v33  ;;  %v1394_v43 = vmul.f32 %v973_v40, %v722_v34  ;;  %v968_v44 = vpop.permute.xlu0 %967  ;;  %1282 = vperm.xlu1 %1842, %v2192_v39   ;;  %2219 = vrcp.f32 %v488_v61  ;;  %v741_v40 = vld [vmem:[%s3798_s1 + $0x1d0] sm:$0xff] }
  0xc3   :  { %v2196_v46 = vpop.eup %2195  ;;  %v1391_v47 = vmul.f32 %v968_v44, %v719_v37  ;;  %v1392_v48 = vmul.f32 %v968_v44, %v720_v38  ;;  %1277 = vperm.xlu0 %1841, %v2194_v41   ;;  %2221 = vrcp.f32 %v487_v3  ;;  %v742_v41 = vld [vmem:[%s3798_s1 + $0x1d8] sm:$0xff]  ;;  %v740_v44 = vld [vmem:[%s3798_s1 + $0x1c8] sm:$0xff]  ;;  %v747_v3 = vld [vmem:[%s3798_s1 + $0x200] sm:$0xff] }
  0xc4   :  { %v2198_v52 = vpop.eup %2197  ;;  %1586 = vst [vmem:[%s3799_s2 + $0x130] sm:$0xff] %v1393_v42  ;;  %1587 = vst.msk [vmem:[%s3799_s2 + $0x138] sm:$0xff] %vm1548_vm0, %v1394_v43  ;;  %v739_v43 = vld [vmem:[%s3798_s1 + $0x1c0] sm:$0xff] }
  0xc5   :  { %v2200_v55 = vpop.eup %2199  ;;  %1584 = vst [vmem:[%s3799_s2 + $0x120] sm:$0xff] %v1391_v47  ;;  %1585 = vst.msk [vmem:[%s3799_s2 + $0x128] sm:$0xff] %vm1548_vm0, %v1392_v48  ;;  %v983_v56 = vpop.permute.xlu1 %982 }
  0xc6   :  { %v2202_v57 = vpop.eup %2201  ;;  %v1397_v58 = vmul.f32 %v983_v56, %v725_v49  ;;  %v1398_v59 = vmul.f32 %v983_v56, %v726_v50  ;;  %v978_v60 = vpop.permute.xlu0 %977  ;;  %1292 = vperm.xlu1 %1842, %v2196_v46   ;;  %v490_v11 = vadd.f32 1.0, %v2200_v55  ;;  %v743_v55 = vld [vmem:[%s3798_s1 + $0x1e0] sm:$0xff]  ;;  %v744_v56 = vld [vmem:[%s3798_s1 + $0x1e8] sm:$0xff] }
  0xc7   :  { %v2204_v62 = vpop.eup %2203  ;;  %v1395_v63 = vmul.f32 %v978_v60, %v723_v53  ;;  %v1396_v0 = vmul.f32 %v978_v60, %v724_v54  ;;  %1287 = vperm.xlu0 %1841, %v2198_v52   ;;  %v489_v17 = vadd.f32 1.0, %v2202_v57  ;;  %v745_v52 = vld [vmem:[%s3798_s1 + $0x1f0] sm:$0xff]  ;;  %v746_v53 = vld [vmem:[%s3798_s1 + $0x1f8] sm:$0xff] }
  0xc8   :  { %v2206_v4 = vpop.eup %2205  ;;  %1590 = vst [vmem:[%s3799_s2 + $0x150] sm:$0xff] %v1397_v58  ;;  %1591 = vst.msk [vmem:[%s3799_s2 + $0x158] sm:$0xff] %vm1548_vm0, %v1398_v59  ;;  %2223 = vrcp.f32 %v490_v11  ;;  %v753_v11 = vld [vmem:[%s3798_s1 + $0x230] sm:$0xff] }
  0xc9   :  { %1588 = vst [vmem:[%s3799_s2 + $0x140] sm:$0xff] %v1395_v63  ;;  %1589 = vst.msk [vmem:[%s3799_s2 + $0x148] sm:$0xff] %vm1548_vm0, %v1396_v0  ;;  %v993_v7 = vpop.permute.xlu1 %992  ;;  %v2208_v12 = vpop.eup %2207  ;;  %2225 = vrcp.f32 %v489_v17  ;;  %v749_v0 = vld [vmem:[%s3798_s1 + $0x210] sm:$0xff] }
  0xca   :  { %v1401_v8 = vmul.f32 %v993_v7, %v729_v1  ;;  %v1402_v9 = vmul.f32 %v993_v7, %v730_v2  ;;  %v988_v10 = vpop.permute.xlu0 %987  ;;  %1302 = vperm.xlu1 %1842, %v2204_v62   ;;  %v2210_v18 = vpop.eup %2209  ;;  %v750_v1 = vld [vmem:[%s3798_s1 + $0x218] sm:$0xff] }
  0xcb   :  { %v1399_v13 = vmul.f32 %v988_v10, %v727_v5  ;;  %v1400_v14 = vmul.f32 %v988_v10, %v728_v6  ;;  %1297 = vperm.xlu0 %1841, %v2206_v4   ;;  %v2212_v25 = vpop.eup %2211  ;;  %v748_v4 = vld [vmem:[%s3798_s1 + $0x208] sm:$0xff] }
  0xcc   :  { %1594 = vst [vmem:[%s3799_s2 + $0x170] sm:$0xff] %v1401_v8  ;;  %1595 = vst.msk [vmem:[%s3799_s2 + $0x178] sm:$0xff] %vm1548_vm0, %v1402_v9  ;;  %v2214_v30 = vpop.eup %2213 }
  0xcd   :  { %1592 = vst [vmem:[%s3799_s2 + $0x160] sm:$0xff] %v1399_v13  ;;  %1593 = vst.msk [vmem:[%s3799_s2 + $0x168] sm:$0xff] %vm1548_vm0, %v1400_v14  ;;  %v1003_v21 = vpop.permute.xlu1 %1002  ;;  %v2216_v37 = vpop.eup %2215  ;;  %v751_v13 = vld [vmem:[%s3798_s1 + $0x220] sm:$0xff]  ;;  %v752_v14 = vld [vmem:[%s3798_s1 + $0x228] sm:$0xff] }
  0xce   :  { %v1405_v22 = vmul.f32 %v1003_v21, %v733_v15  ;;  %v1406_v23 = vmul.f32 %v1003_v21, %v734_v16  ;;  %v998_v24 = vpop.permute.xlu0 %997  ;;  %1312 = vperm.xlu1 %1842, %v2208_v12   ;;  %v2218_v42 = vpop.eup %2217  ;;  %v754_v12 = vld [vmem:[%s3798_s1 + $0x238] sm:$0xff]  ;;  %v757_v21 = vld [vmem:[%s3798_s1 + $0x250] sm:$0xff] }
  0xcf   :  { %v1403_v26 = vmul.f32 %v998_v24, %v731_v19  ;;  %v1404_v27 = vmul.f32 %v998_v24, %v732_v20  ;;  %1307 = vperm.xlu0 %1841, %v2210_v18   ;;  %v2220_v49 = vpop.eup %2219  ;;  %v756_v24 = vld [vmem:[%s3798_s1 + $0x248] sm:$0xff] }
  0xd0   :  { %1598 = vst [vmem:[%s3799_s2 + $0x190] sm:$0xff] %v1405_v22  ;;  %1599 = vst.msk [vmem:[%s3799_s2 + $0x198] sm:$0xff] %vm1548_vm0, %v1406_v23  ;;  %v2222_v54 = vpop.eup %2221  ;;  %v758_v22 = vld [vmem:[%s3798_s1 + $0x258] sm:$0xff]  ;;  %v755_v23 = vld [vmem:[%s3798_s1 + $0x240] sm:$0xff] }
  0xd1   :  { %1596 = vst [vmem:[%s3799_s2 + $0x180] sm:$0xff] %v1403_v26  ;;  %1597 = vst.msk [vmem:[%s3799_s2 + $0x188] sm:$0xff] %vm1548_vm0, %v1404_v27  ;;  %v1013_v33 = vpop.permute.xlu1 %1012 }
  0xd2   :  { %v1409_v34 = vmul.f32 %v1013_v33, %v737_v28  ;;  %v1410_v35 = vmul.f32 %v1013_v33, %v738_v29  ;;  %v1008_v36 = vpop.permute.xlu0 %1007  ;;  %1322 = vperm.xlu1 %1842, %v2212_v25   ;;  %v759_v33 = vld [vmem:[%s3798_s1 + $0x260] sm:$0xff] }
  0xd3   :  { %v1407_v38 = vmul.f32 %v1008_v36, %v735_v31  ;;  %v1408_v39 = vmul.f32 %v1008_v36, %v736_v32  ;;  %1317 = vperm.xlu0 %1841, %v2214_v30   ;;  %v761_v31 = vld [vmem:[%s3798_s1 + $0x270] sm:$0xff]  ;;  %v762_v32 = vld [vmem:[%s3798_s1 + $0x278] sm:$0xff] }
  0xd4   :  { %1602 = vst [vmem:[%s3799_s2 + $0x1b0] sm:$0xff] %v1409_v34  ;;  %1603 = vst.msk [vmem:[%s3799_s2 + $0x1b8] sm:$0xff] %vm1548_vm0, %v1410_v35  ;;  %v760_v34 = vld [vmem:[%s3798_s1 + $0x268] sm:$0xff] }
  0xd5   :  { %1600 = vst [vmem:[%s3799_s2 + $0x1a0] sm:$0xff] %v1407_v38  ;;  %1601 = vst.msk [vmem:[%s3799_s2 + $0x1a8] sm:$0xff] %vm1548_vm0, %v1408_v39  ;;  %v1023_v45 = vpop.permute.xlu1 %1022  ;;  %v2224_v61 = vpop.eup %2223 }
  0xd6   :  { %v1413_v46 = vmul.f32 %v1023_v45, %v741_v40  ;;  %v1414_v47 = vmul.f32 %v1023_v45, %v742_v41  ;;  %v1018_v48 = vpop.permute.xlu0 %1017  ;;  %1332 = vperm.xlu1 %1842, %v2216_v37   ;;  %v2226_v2 = vpop.eup %2225  ;;  %v765_v41 = vld [vmem:[%s3798_s1 + $0x290] sm:$0xff] }
  0xd7   :  { %v1411_v50 = vmul.f32 %v1018_v48, %v739_v43  ;;  %v1412_v51 = vmul.f32 %v1018_v48, %v740_v44  ;;  %1327 = vperm.xlu0 %1841, %v2218_v42   ;;  %v766_v42 = vld [vmem:[%s3798_s1 + $0x298] sm:$0xff]  ;;  %v763_v43 = vld [vmem:[%s3798_s1 + $0x280] sm:$0xff]  ;;  %v764_v44 = vld [vmem:[%s3798_s1 + $0x288] sm:$0xff] }
  0xd8   :  { %1606 = vst [vmem:[%s3799_s2 + $0x1d0] sm:$0xff] %v1413_v46  ;;  %1607 = vst.msk [vmem:[%s3799_s2 + $0x1d8] sm:$0xff] %vm1548_vm0, %v1414_v47 }
  0xd9   :  { %1604 = vst [vmem:[%s3799_s2 + $0x1c0] sm:$0xff] %v1411_v50  ;;  %1605 = vst.msk [vmem:[%s3799_s2 + $0x1c8] sm:$0xff] %vm1548_vm0, %v1412_v51  ;;  %v1033_v57 = vpop.permute.xlu1 %1032  ;;  %v769_v51 = vld [vmem:[%s3798_s1 + $0x2b0] sm:$0xff] }
  0xda   :  { %v1417_v58 = vmul.f32 %v1033_v57, %v745_v52  ;;  %v1418_v59 = vmul.f32 %v1033_v57, %v746_v53  ;;  %v1028_v60 = vpop.permute.xlu0 %1027  ;;  %1342 = vperm.xlu1 %1842, %v2220_v49   ;;  %v770_v52 = vld [vmem:[%s3798_s1 + $0x2b8] sm:$0xff]  ;;  %v767_v53 = vld [vmem:[%s3798_s1 + $0x2a0] sm:$0xff] }
  0xdb   :  { %v1415_v62 = vmul.f32 %v1028_v60, %v743_v55  ;;  %v1416_v63 = vmul.f32 %v1028_v60, %v744_v56  ;;  %1337 = vperm.xlu0 %1841, %v2222_v54   ;;  %v768_v54 = vld [vmem:[%s3798_s1 + $0x2a8] sm:$0xff] }
  0xdc   :  { %1610 = vst [vmem:[%s3799_s2 + $0x1f0] sm:$0xff] %v1417_v58  ;;  %1611 = vst.msk [vmem:[%s3799_s2 + $0x1f8] sm:$0xff] %vm1548_vm0, %v1418_v59 }
  0xdd   :  { %1608 = vst [vmem:[%s3799_s2 + $0x1e0] sm:$0xff] %v1415_v62  ;;  %1609 = vst.msk [vmem:[%s3799_s2 + $0x1e8] sm:$0xff] %vm1548_vm0, %v1416_v63  ;;  %v1043_v5 = vpop.permute.xlu1 %1042  ;;  %v774_v62 = vld [vmem:[%s3798_s1 + $0x2d8] sm:$0xff]  ;;  %v771_v63 = vld [vmem:[%s3798_s1 + $0x2c0] sm:$0xff] }
  0xde   :  { %v1421_v6 = vmul.f32 %v1043_v5, %v749_v0  ;;  %v1422_v7 = vmul.f32 %v1043_v5, %v750_v1  ;;  %v1038_v8 = vpop.permute.xlu0 %1037  ;;  %1352 = vperm.xlu1 %1842, %v2224_v61   ;;  %v773_v61 = vld [vmem:[%s3798_s1 + $0x2d0] sm:$0xff]  ;;  %v772_v0 = vld [vmem:[%s3798_s1 + $0x2c8] sm:$0xff] }
  0xdf   :  { %v1419_v9 = vmul.f32 %v1038_v8, %v747_v3  ;;  %v1420_v10 = vmul.f32 %v1038_v8, %v748_v4  ;;  %1347 = vperm.xlu0 %1841, %v2226_v2   ;;  %v778_v8 = vld [vmem:[%s3798_s1 + $0x2f8] sm:$0xff] }
  0xe0   :  { %1614 = vst [vmem:[%s3799_s2 + $0x210] sm:$0xff] %v1421_v6  ;;  %1615 = vst.msk [vmem:[%s3799_s2 + $0x218] sm:$0xff] %vm1548_vm0, %v1422_v7  ;;  %v777_v7 = vld [vmem:[%s3798_s1 + $0x2f0] sm:$0xff] }
  0xe1   :  { %1612 = vst [vmem:[%s3799_s2 + $0x200] sm:$0xff] %v1419_v9  ;;  %1613 = vst.msk [vmem:[%s3799_s2 + $0x208] sm:$0xff] %vm1548_vm0, %v1420_v10  ;;  %v1053_v15 = vpop.permute.xlu1 %1052  ;;  %v775_v9 = vld [vmem:[%s3798_s1 + $0x2e0] sm:$0xff]  ;;  %v776_v10 = vld [vmem:[%s3798_s1 + $0x2e8] sm:$0xff] }
  0xe2   :  { %v1425_v16 = vmul.f32 %v1053_v15, %v753_v11  ;;  %v1426_v17 = vmul.f32 %v1053_v15, %v754_v12  ;;  %v1048_v18 = vpop.permute.xlu0 %1047 }
  0xe3   :  { %v1423_v19 = vmul.f32 %v1048_v18, %v751_v13  ;;  %v1424_v20 = vmul.f32 %v1048_v18, %v752_v14  ;;  %v782_v18 = vld [vmem:[%s3798_s1 + $0x318] sm:$0xff] }
  0xe4   :  { %1618 = vst [vmem:[%s3799_s2 + $0x230] sm:$0xff] %v1425_v16  ;;  %1619 = vst.msk [vmem:[%s3799_s2 + $0x238] sm:$0xff] %vm1548_vm0, %v1426_v17  ;;  %v781_v17 = vld [vmem:[%s3798_s1 + $0x310] sm:$0xff] }
  0xe5   :  { %1616 = vst [vmem:[%s3799_s2 + $0x220] sm:$0xff] %v1423_v19  ;;  %1617 = vst.msk [vmem:[%s3799_s2 + $0x228] sm:$0xff] %vm1548_vm0, %v1424_v20  ;;  %v1063_v25 = vpop.permute.xlu1 %1062  ;;  %v779_v19 = vld [vmem:[%s3798_s1 + $0x300] sm:$0xff]  ;;  %v780_v20 = vld [vmem:[%s3798_s1 + $0x308] sm:$0xff] }
  0xe6   :  { %v1429_v26 = vmul.f32 %v1063_v25, %v757_v21  ;;  %v1430_v27 = vmul.f32 %v1063_v25, %v758_v22  ;;  %v1058_v28 = vpop.permute.xlu0 %1057 }
  0xe7   :  { %v1427_v29 = vmul.f32 %v1058_v28, %v755_v23  ;;  %v1428_v30 = vmul.f32 %v1058_v28, %v756_v24  ;;  %v786_v28 = vld [vmem:[%s3798_s1 + $0x338] sm:$0xff] }
  0xe8   :  { %1622 = vst [vmem:[%s3799_s2 + $0x250] sm:$0xff] %v1429_v26  ;;  %1623 = vst.msk [vmem:[%s3799_s2 + $0x258] sm:$0xff] %vm1548_vm0, %v1430_v27  ;;  %v785_v27 = vld [vmem:[%s3798_s1 + $0x330] sm:$0xff] }
  0xe9   :  { %1620 = vst [vmem:[%s3799_s2 + $0x240] sm:$0xff] %v1427_v29  ;;  %1621 = vst.msk [vmem:[%s3799_s2 + $0x248] sm:$0xff] %vm1548_vm0, %v1428_v30  ;;  %v1073_v35 = vpop.permute.xlu1 %1072  ;;  %v783_v29 = vld [vmem:[%s3798_s1 + $0x320] sm:$0xff]  ;;  %v784_v30 = vld [vmem:[%s3798_s1 + $0x328] sm:$0xff] }
  0xea   :  { %v1433_v36 = vmul.f32 %v1073_v35, %v761_v31  ;;  %v1434_v37 = vmul.f32 %v1073_v35, %v762_v32  ;;  %v1068_v38 = vpop.permute.xlu0 %1067 }
  0xeb   :  { %v1431_v39 = vmul.f32 %v1068_v38, %v759_v33  ;;  %v1432_v40 = vmul.f32 %v1068_v38, %v760_v34  ;;  %v790_v38 = vld [vmem:[%s3798_s1 + $0x358] sm:$0xff] }
  0xec   :  { %1626 = vst [vmem:[%s3799_s2 + $0x270] sm:$0xff] %v1433_v36  ;;  %1627 = vst.msk [vmem:[%s3799_s2 + $0x278] sm:$0xff] %vm1548_vm0, %v1434_v37  ;;  %v789_v37 = vld [vmem:[%s3798_s1 + $0x350] sm:$0xff] }
  0xed   :  { %1624 = vst [vmem:[%s3799_s2 + $0x260] sm:$0xff] %v1431_v39  ;;  %1625 = vst.msk [vmem:[%s3799_s2 + $0x268] sm:$0xff] %vm1548_vm0, %v1432_v40  ;;  %v1083_v45 = vpop.permute.xlu1 %1082  ;;  %v787_v39 = vld [vmem:[%s3798_s1 + $0x340] sm:$0xff]  ;;  %v788_v40 = vld [vmem:[%s3798_s1 + $0x348] sm:$0xff] }
  0xee   :  { %v1437_v46 = vmul.f32 %v1083_v45, %v765_v41  ;;  %v1438_v47 = vmul.f32 %v1083_v45, %v766_v42  ;;  %v1078_v48 = vpop.permute.xlu0 %1077 }
  0xef   :  { %v1435_v49 = vmul.f32 %v1078_v48, %v763_v43  ;;  %v1436_v50 = vmul.f32 %v1078_v48, %v764_v44  ;;  %v794_v48 = vld [vmem:[%s3798_s1 + $0x378] sm:$0xff] }
  0xf0   :  { %1630 = vst [vmem:[%s3799_s2 + $0x290] sm:$0xff] %v1437_v46  ;;  %1631 = vst.msk [vmem:[%s3799_s2 + $0x298] sm:$0xff] %vm1548_vm0, %v1438_v47  ;;  %v793_v47 = vld [vmem:[%s3798_s1 + $0x370] sm:$0xff] }
  0xf1   :  { %1628 = vst [vmem:[%s3799_s2 + $0x280] sm:$0xff] %v1435_v49  ;;  %1629 = vst.msk [vmem:[%s3799_s2 + $0x288] sm:$0xff] %vm1548_vm0, %v1436_v50  ;;  %v1093_v55 = vpop.permute.xlu1 %1092  ;;  %v791_v49 = vld [vmem:[%s3798_s1 + $0x360] sm:$0xff]  ;;  %v792_v50 = vld [vmem:[%s3798_s1 + $0x368] sm:$0xff] }
  0xf2   :  { %v1441_v56 = vmul.f32 %v1093_v55, %v769_v51  ;;  %v1442_v57 = vmul.f32 %v1093_v55, %v770_v52  ;;  %v1088_v58 = vpop.permute.xlu0 %1087 }
  0xf3   :  { %v1439_v59 = vmul.f32 %v1088_v58, %v767_v53  ;;  %v1440_v60 = vmul.f32 %v1088_v58, %v768_v54  ;;  %v798_v58 = vld [vmem:[%s3798_s1 + $0x398] sm:$0xff] }
  0xf4   :  { %1634 = vst [vmem:[%s3799_s2 + $0x2b0] sm:$0xff] %v1441_v56  ;;  %1635 = vst.msk [vmem:[%s3799_s2 + $0x2b8] sm:$0xff] %vm1548_vm0, %v1442_v57  ;;  %v797_v57 = vld [vmem:[%s3798_s1 + $0x390] sm:$0xff] }
  0xf5   :  { %1632 = vst [vmem:[%s3799_s2 + $0x2a0] sm:$0xff] %v1439_v59  ;;  %1633 = vst.msk [vmem:[%s3799_s2 + $0x2a8] sm:$0xff] %vm1548_vm0, %v1440_v60  ;;  %v1103_v1 = vpop.permute.xlu1 %1102  ;;  %v795_v59 = vld [vmem:[%s3798_s1 + $0x380] sm:$0xff]  ;;  %v796_v60 = vld [vmem:[%s3798_s1 + $0x388] sm:$0xff] }
  0xf6   :  { %v1445_v2 = vmul.f32 %v1103_v1, %v773_v61  ;;  %v1446_v3 = vmul.f32 %v1103_v1, %v774_v62  ;;  %v1098_v4 = vpop.permute.xlu0 %1097 }
  0xf7   :  { %v1443_v5 = vmul.f32 %v1098_v4, %v771_v63  ;;  %v1444_v6 = vmul.f32 %v1098_v4, %v772_v0  ;;  %v802_v4 = vld [vmem:[%s3798_s1 + $0x3b8] sm:$0xff] }
  0xf8   :  { %1638 = vst [vmem:[%s3799_s2 + $0x2d0] sm:$0xff] %v1445_v2  ;;  %1639 = vst.msk [vmem:[%s3799_s2 + $0x2d8] sm:$0xff] %vm1548_vm0, %v1446_v3  ;;  %v801_v3 = vld [vmem:[%s3798_s1 + $0x3b0] sm:$0xff] }
  0xf9   :  { %1636 = vst [vmem:[%s3799_s2 + $0x2c0] sm:$0xff] %v1443_v5  ;;  %1637 = vst.msk [vmem:[%s3799_s2 + $0x2c8] sm:$0xff] %vm1548_vm0, %v1444_v6  ;;  %v1113_v11 = vpop.permute.xlu1 %1112  ;;  %v799_v5 = vld [vmem:[%s3798_s1 + $0x3a0] sm:$0xff]  ;;  %v800_v6 = vld [vmem:[%s3798_s1 + $0x3a8] sm:$0xff] }
  0xfa   :  { %v1449_v12 = vmul.f32 %v1113_v11, %v777_v7  ;;  %v1450_v13 = vmul.f32 %v1113_v11, %v778_v8  ;;  %v1108_v14 = vpop.permute.xlu0 %1107 }
  0xfb   :  { %v1447_v15 = vmul.f32 %v1108_v14, %v775_v9  ;;  %v1448_v16 = vmul.f32 %v1108_v14, %v776_v10  ;;  %v806_v14 = vld [vmem:[%s3798_s1 + $0x3d8] sm:$0xff] }
  0xfc   :  { %1642 = vst [vmem:[%s3799_s2 + $0x2f0] sm:$0xff] %v1449_v12  ;;  %1643 = vst.msk [vmem:[%s3799_s2 + $0x2f8] sm:$0xff] %vm1548_vm0, %v1450_v13  ;;  %v805_v13 = vld [vmem:[%s3798_s1 + $0x3d0] sm:$0xff] }
  0xfd   :  { %1640 = vst [vmem:[%s3799_s2 + $0x2e0] sm:$0xff] %v1447_v15  ;;  %1641 = vst.msk [vmem:[%s3799_s2 + $0x2e8] sm:$0xff] %vm1548_vm0, %v1448_v16  ;;  %v1123_v21 = vpop.permute.xlu1 %1122  ;;  %v803_v15 = vld [vmem:[%s3798_s1 + $0x3c0] sm:$0xff]  ;;  %v804_v16 = vld [vmem:[%s3798_s1 + $0x3c8] sm:$0xff] }
  0xfe   :  { %v1453_v22 = vmul.f32 %v1123_v21, %v781_v17  ;;  %v1454_v23 = vmul.f32 %v1123_v21, %v782_v18  ;;  %v1118_v24 = vpop.permute.xlu0 %1117 }
  0xff   :  { %v1451_v25 = vmul.f32 %v1118_v24, %v779_v19  ;;  %v1452_v26 = vmul.f32 %v1118_v24, %v780_v20  ;;  %v810_v24 = vld [vmem:[%s3798_s1 + $0x3f8] sm:$0xff] }
 0x100   :  { %1646 = vst [vmem:[%s3799_s2 + $0x310] sm:$0xff] %v1453_v22  ;;  %1647 = vst.msk [vmem:[%s3799_s2 + $0x318] sm:$0xff] %vm1548_vm0, %v1454_v23  ;;  %v809_v23 = vld [vmem:[%s3798_s1 + $0x3f0] sm:$0xff] }
 0x101   :  { %1644 = vst [vmem:[%s3799_s2 + $0x300] sm:$0xff] %v1451_v25  ;;  %1645 = vst.msk [vmem:[%s3799_s2 + $0x308] sm:$0xff] %vm1548_vm0, %v1452_v26  ;;  %v1133_v31 = vpop.permute.xlu1 %1132  ;;  %v807_v25 = vld [vmem:[%s3798_s1 + $0x3e0] sm:$0xff]  ;;  %v808_v26 = vld [vmem:[%s3798_s1 + $0x3e8] sm:$0xff] }
 0x102   :  { %v1457_v32 = vmul.f32 %v1133_v31, %v785_v27  ;;  %v1458_v33 = vmul.f32 %v1133_v31, %v786_v28  ;;  %v1128_v34 = vpop.permute.xlu0 %1127 }
 0x103   :  { %v1455_v35 = vmul.f32 %v1128_v34, %v783_v29  ;;  %v1456_v36 = vmul.f32 %v1128_v34, %v784_v30  ;;  %v814_v34 = vld [vmem:[%s3798_s1 + $0x418] sm:$0xff] }
 0x104   :  { %1650 = vst [vmem:[%s3799_s2 + $0x330] sm:$0xff] %v1457_v32  ;;  %1651 = vst.msk [vmem:[%s3799_s2 + $0x338] sm:$0xff] %vm1548_vm0, %v1458_v33  ;;  %v813_v33 = vld [vmem:[%s3798_s1 + $0x410] sm:$0xff] }
 0x105   :  { %1648 = vst [vmem:[%s3799_s2 + $0x320] sm:$0xff] %v1455_v35  ;;  %1649 = vst.msk [vmem:[%s3799_s2 + $0x328] sm:$0xff] %vm1548_vm0, %v1456_v36  ;;  %v1143_v41 = vpop.permute.xlu1 %1142  ;;  %v811_v35 = vld [vmem:[%s3798_s1 + $0x400] sm:$0xff]  ;;  %v812_v36 = vld [vmem:[%s3798_s1 + $0x408] sm:$0xff] }
 0x106   :  { %v1461_v42 = vmul.f32 %v1143_v41, %v789_v37  ;;  %v1462_v43 = vmul.f32 %v1143_v41, %v790_v38  ;;  %v1138_v44 = vpop.permute.xlu0 %1137 }
 0x107   :  { %v1459_v45 = vmul.f32 %v1138_v44, %v787_v39  ;;  %v1460_v46 = vmul.f32 %v1138_v44, %v788_v40  ;;  %v818_v44 = vld [vmem:[%s3798_s1 + $0x438] sm:$0xff] }
 0x108   :  { %1654 = vst [vmem:[%s3799_s2 + $0x350] sm:$0xff] %v1461_v42  ;;  %1655 = vst.msk [vmem:[%s3799_s2 + $0x358] sm:$0xff] %vm1548_vm0, %v1462_v43  ;;  %v817_v43 = vld [vmem:[%s3798_s1 + $0x430] sm:$0xff] }
 0x109   :  { %1652 = vst [vmem:[%s3799_s2 + $0x340] sm:$0xff] %v1459_v45  ;;  %1653 = vst.msk [vmem:[%s3799_s2 + $0x348] sm:$0xff] %vm1548_vm0, %v1460_v46  ;;  %v1153_v51 = vpop.permute.xlu1 %1152  ;;  %v815_v45 = vld [vmem:[%s3798_s1 + $0x420] sm:$0xff]  ;;  %v816_v46 = vld [vmem:[%s3798_s1 + $0x428] sm:$0xff] }
 0x10a   :  { %v1465_v52 = vmul.f32 %v1153_v51, %v793_v47  ;;  %v1466_v53 = vmul.f32 %v1153_v51, %v794_v48  ;;  %v1148_v54 = vpop.permute.xlu0 %1147 }
 0x10b   :  { %v1463_v55 = vmul.f32 %v1148_v54, %v791_v49  ;;  %v1464_v56 = vmul.f32 %v1148_v54, %v792_v50  ;;  %v822_v54 = vld [vmem:[%s3798_s1 + $0x458] sm:$0xff] }
 0x10c   :  { %1658 = vst [vmem:[%s3799_s2 + $0x370] sm:$0xff] %v1465_v52  ;;  %1659 = vst.msk [vmem:[%s3799_s2 + $0x378] sm:$0xff] %vm1548_vm0, %v1466_v53  ;;  %v821_v53 = vld [vmem:[%s3798_s1 + $0x450] sm:$0xff] }
 0x10d   :  { %1656 = vst [vmem:[%s3799_s2 + $0x360] sm:$0xff] %v1463_v55  ;;  %1657 = vst.msk [vmem:[%s3799_s2 + $0x368] sm:$0xff] %vm1548_vm0, %v1464_v56  ;;  %v1163_v61 = vpop.permute.xlu1 %1162  ;;  %v819_v55 = vld [vmem:[%s3798_s1 + $0x440] sm:$0xff]  ;;  %v820_v56 = vld [vmem:[%s3798_s1 + $0x448] sm:$0xff] }
 0x10e   :  { %v1469_v62 = vmul.f32 %v1163_v61, %v797_v57  ;;  %v1470_v63 = vmul.f32 %v1163_v61, %v798_v58  ;;  %v1158_v0 = vpop.permute.xlu0 %1157 }
 0x10f   :  { %v1467_v1 = vmul.f32 %v1158_v0, %v795_v59  ;;  %v1468_v2 = vmul.f32 %v1158_v0, %v796_v60  ;;  %v826_v0 = vld [vmem:[%s3798_s1 + $0x478] sm:$0xff] }
 0x110   :  { %1662 = vst [vmem:[%s3799_s2 + $0x390] sm:$0xff] %v1469_v62  ;;  %1663 = vst.msk [vmem:[%s3799_s2 + $0x398] sm:$0xff] %vm1548_vm0, %v1470_v63  ;;  %v825_v63 = vld [vmem:[%s3798_s1 + $0x470] sm:$0xff] }
 0x111   :  { %1660 = vst [vmem:[%s3799_s2 + $0x380] sm:$0xff] %v1467_v1  ;;  %1661 = vst.msk [vmem:[%s3799_s2 + $0x388] sm:$0xff] %vm1548_vm0, %v1468_v2  ;;  %v1173_v7 = vpop.permute.xlu1 %1172  ;;  %v823_v1 = vld [vmem:[%s3798_s1 + $0x460] sm:$0xff]  ;;  %v824_v2 = vld [vmem:[%s3798_s1 + $0x468] sm:$0xff] }
 0x112   :  { %v1473_v8 = vmul.f32 %v1173_v7, %v801_v3  ;;  %v1474_v9 = vmul.f32 %v1173_v7, %v802_v4  ;;  %v1168_v10 = vpop.permute.xlu0 %1167 }
 0x113   :  { %v1471_v11 = vmul.f32 %v1168_v10, %v799_v5  ;;  %v1472_v12 = vmul.f32 %v1168_v10, %v800_v6  ;;  %v830_v10 = vld [vmem:[%s3798_s1 + $0x498] sm:$0xff] }
 0x114   :  { %1666 = vst [vmem:[%s3799_s2 + $0x3b0] sm:$0xff] %v1473_v8  ;;  %1667 = vst.msk [vmem:[%s3799_s2 + $0x3b8] sm:$0xff] %vm1548_vm0, %v1474_v9  ;;  %v829_v9 = vld [vmem:[%s3798_s1 + $0x490] sm:$0xff] }
 0x115   :  { %1664 = vst [vmem:[%s3799_s2 + $0x3a0] sm:$0xff] %v1471_v11  ;;  %1665 = vst.msk [vmem:[%s3799_s2 + $0x3a8] sm:$0xff] %vm1548_vm0, %v1472_v12  ;;  %v1183_v17 = vpop.permute.xlu1 %1182  ;;  %v827_v11 = vld [vmem:[%s3798_s1 + $0x480] sm:$0xff]  ;;  %v828_v12 = vld [vmem:[%s3798_s1 + $0x488] sm:$0xff] }
 0x116   :  { %v1477_v18 = vmul.f32 %v1183_v17, %v805_v13  ;;  %v1478_v19 = vmul.f32 %v1183_v17, %v806_v14  ;;  %v1178_v20 = vpop.permute.xlu0 %1177 }
 0x117   :  { %v1475_v21 = vmul.f32 %v1178_v20, %v803_v15  ;;  %v1476_v22 = vmul.f32 %v1178_v20, %v804_v16  ;;  %v834_v20 = vld [vmem:[%s3798_s1 + $0x4b8] sm:$0xff] }
 0x118   :  { %1670 = vst [vmem:[%s3799_s2 + $0x3d0] sm:$0xff] %v1477_v18  ;;  %1671 = vst.msk [vmem:[%s3799_s2 + $0x3d8] sm:$0xff] %vm1548_vm0, %v1478_v19  ;;  %v833_v19 = vld [vmem:[%s3798_s1 + $0x4b0] sm:$0xff] }
 0x119   :  { %1668 = vst [vmem:[%s3799_s2 + $0x3c0] sm:$0xff] %v1475_v21  ;;  %1669 = vst.msk [vmem:[%s3799_s2 + $0x3c8] sm:$0xff] %vm1548_vm0, %v1476_v22  ;;  %v1193_v27 = vpop.permute.xlu1 %1192  ;;  %v831_v21 = vld [vmem:[%s3798_s1 + $0x4a0] sm:$0xff]  ;;  %v832_v22 = vld [vmem:[%s3798_s1 + $0x4a8] sm:$0xff] }
 0x11a   :  { %v1481_v28 = vmul.f32 %v1193_v27, %v809_v23  ;;  %v1482_v29 = vmul.f32 %v1193_v27, %v810_v24  ;;  %v1188_v30 = vpop.permute.xlu0 %1187 }
 0x11b   :  { %v1479_v31 = vmul.f32 %v1188_v30, %v807_v25  ;;  %v1480_v32 = vmul.f32 %v1188_v30, %v808_v26  ;;  %v838_v30 = vld [vmem:[%s3798_s1 + $0x4d8] sm:$0xff] }
 0x11c   :  { %1674 = vst [vmem:[%s3799_s2 + $0x3f0] sm:$0xff] %v1481_v28  ;;  %1675 = vst.msk [vmem:[%s3799_s2 + $0x3f8] sm:$0xff] %vm1548_vm0, %v1482_v29  ;;  %v837_v29 = vld [vmem:[%s3798_s1 + $0x4d0] sm:$0xff] }
 0x11d   :  { %1672 = vst [vmem:[%s3799_s2 + $0x3e0] sm:$0xff] %v1479_v31  ;;  %1673 = vst.msk [vmem:[%s3799_s2 + $0x3e8] sm:$0xff] %vm1548_vm0, %v1480_v32  ;;  %v1203_v37 = vpop.permute.xlu1 %1202  ;;  %v835_v31 = vld [vmem:[%s3798_s1 + $0x4c0] sm:$0xff]  ;;  %v836_v32 = vld [vmem:[%s3798_s1 + $0x4c8] sm:$0xff] }
 0x11e   :  { %v1485_v38 = vmul.f32 %v1203_v37, %v813_v33  ;;  %v1486_v39 = vmul.f32 %v1203_v37, %v814_v34  ;;  %v1198_v40 = vpop.permute.xlu0 %1197 }
 0x11f   :  { %v1483_v41 = vmul.f32 %v1198_v40, %v811_v35  ;;  %v1484_v42 = vmul.f32 %v1198_v40, %v812_v36  ;;  %v842_v40 = vld [vmem:[%s3798_s1 + $0x4f8] sm:$0xff] }
 0x120   :  { %1678 = vst [vmem:[%s3799_s2 + $0x410] sm:$0xff] %v1485_v38  ;;  %1679 = vst.msk [vmem:[%s3799_s2 + $0x418] sm:$0xff] %vm1548_vm0, %v1486_v39  ;;  %v841_v39 = vld [vmem:[%s3798_s1 + $0x4f0] sm:$0xff] }
 0x121   :  { %1676 = vst [vmem:[%s3799_s2 + $0x400] sm:$0xff] %v1483_v41  ;;  %1677 = vst.msk [vmem:[%s3799_s2 + $0x408] sm:$0xff] %vm1548_vm0, %v1484_v42  ;;  %v1213_v47 = vpop.permute.xlu1 %1212  ;;  %v839_v41 = vld [vmem:[%s3798_s1 + $0x4e0] sm:$0xff]  ;;  %v840_v42 = vld [vmem:[%s3798_s1 + $0x4e8] sm:$0xff] }
 0x122   :  { %v1489_v48 = vmul.f32 %v1213_v47, %v817_v43  ;;  %v1490_v49 = vmul.f32 %v1213_v47, %v818_v44  ;;  %v1208_v50 = vpop.permute.xlu0 %1207 }
 0x123   :  { %v1487_v51 = vmul.f32 %v1208_v50, %v815_v45  ;;  %v1488_v52 = vmul.f32 %v1208_v50, %v816_v46  ;;  %v846_v50 = vld [vmem:[%s3798_s1 + $0x518] sm:$0xff] }
 0x124   :  { %1682 = vst [vmem:[%s3799_s2 + $0x430] sm:$0xff] %v1489_v48  ;;  %1683 = vst.msk [vmem:[%s3799_s2 + $0x438] sm:$0xff] %vm1548_vm0, %v1490_v49  ;;  %v845_v49 = vld [vmem:[%s3798_s1 + $0x510] sm:$0xff] }
 0x125   :  { %1680 = vst [vmem:[%s3799_s2 + $0x420] sm:$0xff] %v1487_v51  ;;  %1681 = vst.msk [vmem:[%s3799_s2 + $0x428] sm:$0xff] %vm1548_vm0, %v1488_v52  ;;  %v1223_v57 = vpop.permute.xlu1 %1222  ;;  %v843_v51 = vld [vmem:[%s3798_s1 + $0x500] sm:$0xff]  ;;  %v844_v52 = vld [vmem:[%s3798_s1 + $0x508] sm:$0xff] }
 0x126   :  { %v1493_v58 = vmul.f32 %v1223_v57, %v821_v53  ;;  %v1494_v59 = vmul.f32 %v1223_v57, %v822_v54  ;;  %v1218_v60 = vpop.permute.xlu0 %1217 }
 0x127   :  { %v1491_v61 = vmul.f32 %v1218_v60, %v819_v55  ;;  %v1492_v62 = vmul.f32 %v1218_v60, %v820_v56  ;;  %v850_v60 = vld [vmem:[%s3798_s1 + $0x538] sm:$0xff] }
 0x128   :  { %1686 = vst [vmem:[%s3799_s2 + $0x450] sm:$0xff] %v1493_v58  ;;  %1687 = vst.msk [vmem:[%s3799_s2 + $0x458] sm:$0xff] %vm1548_vm0, %v1494_v59  ;;  %v849_v59 = vld [vmem:[%s3798_s1 + $0x530] sm:$0xff] }
 0x129   :  { %1684 = vst [vmem:[%s3799_s2 + $0x440] sm:$0xff] %v1491_v61  ;;  %1685 = vst.msk [vmem:[%s3799_s2 + $0x448] sm:$0xff] %vm1548_vm0, %v1492_v62  ;;  %v1233_v3 = vpop.permute.xlu1 %1232  ;;  %v847_v61 = vld [vmem:[%s3798_s1 + $0x520] sm:$0xff]  ;;  %v848_v62 = vld [vmem:[%s3798_s1 + $0x528] sm:$0xff] }
 0x12a   :  { %v1497_v4 = vmul.f32 %v1233_v3, %v825_v63  ;;  %v1498_v5 = vmul.f32 %v1233_v3, %v826_v0  ;;  %v1228_v6 = vpop.permute.xlu0 %1227 }
 0x12b   :  { %v1495_v7 = vmul.f32 %v1228_v6, %v823_v1  ;;  %v1496_v8 = vmul.f32 %v1228_v6, %v824_v2  ;;  %v854_v6 = vld [vmem:[%s3798_s1 + $0x558] sm:$0xff] }
 0x12c   :  { %1690 = vst [vmem:[%s3799_s2 + $0x470] sm:$0xff] %v1497_v4  ;;  %1691 = vst.msk [vmem:[%s3799_s2 + $0x478] sm:$0xff] %vm1548_vm0, %v1498_v5  ;;  %v853_v5 = vld [vmem:[%s3798_s1 + $0x550] sm:$0xff] }
 0x12d   :  { %1688 = vst [vmem:[%s3799_s2 + $0x460] sm:$0xff] %v1495_v7  ;;  %1689 = vst.msk [vmem:[%s3799_s2 + $0x468] sm:$0xff] %vm1548_vm0, %v1496_v8  ;;  %v1243_v13 = vpop.permute.xlu1 %1242  ;;  %v851_v7 = vld [vmem:[%s3798_s1 + $0x540] sm:$0xff]  ;;  %v852_v8 = vld [vmem:[%s3798_s1 + $0x548] sm:$0xff] }
 0x12e   :  { %v1501_v14 = vmul.f32 %v1243_v13, %v829_v9  ;;  %v1502_v15 = vmul.f32 %v1243_v13, %v830_v10  ;;  %v1238_v16 = vpop.permute.xlu0 %1237 }
 0x12f   :  { %v1499_v17 = vmul.f32 %v1238_v16, %v827_v11  ;;  %v1500_v18 = vmul.f32 %v1238_v16, %v828_v12  ;;  %v858_v16 = vld [vmem:[%s3798_s1 + $0x578] sm:$0xff] }
 0x130   :  { %1694 = vst [vmem:[%s3799_s2 + $0x490] sm:$0xff] %v1501_v14  ;;  %1695 = vst.msk [vmem:[%s3799_s2 + $0x498] sm:$0xff] %vm1548_vm0, %v1502_v15  ;;  %v857_v15 = vld [vmem:[%s3798_s1 + $0x570] sm:$0xff] }
 0x131   :  { %1692 = vst [vmem:[%s3799_s2 + $0x480] sm:$0xff] %v1499_v17  ;;  %1693 = vst.msk [vmem:[%s3799_s2 + $0x488] sm:$0xff] %vm1548_vm0, %v1500_v18  ;;  %v1253_v23 = vpop.permute.xlu1 %1252  ;;  %v855_v17 = vld [vmem:[%s3798_s1 + $0x560] sm:$0xff]  ;;  %v856_v18 = vld [vmem:[%s3798_s1 + $0x568] sm:$0xff] }
 0x132   :  { %v1505_v24 = vmul.f32 %v1253_v23, %v833_v19  ;;  %v1506_v25 = vmul.f32 %v1253_v23, %v834_v20  ;;  %v1248_v26 = vpop.permute.xlu0 %1247 }
 0x133   :  { %v1503_v27 = vmul.f32 %v1248_v26, %v831_v21  ;;  %v1504_v28 = vmul.f32 %v1248_v26, %v832_v22  ;;  %v862_v26 = vld [vmem:[%s3798_s1 + $0x598] sm:$0xff] }
 0x134   :  { %1698 = vst [vmem:[%s3799_s2 + $0x4b0] sm:$0xff] %v1505_v24  ;;  %1699 = vst.msk [vmem:[%s3799_s2 + $0x4b8] sm:$0xff] %vm1548_vm0, %v1506_v25  ;;  %v861_v25 = vld [vmem:[%s3798_s1 + $0x590] sm:$0xff] }
 0x135   :  { %1696 = vst [vmem:[%s3799_s2 + $0x4a0] sm:$0xff] %v1503_v27  ;;  %1697 = vst.msk [vmem:[%s3799_s2 + $0x4a8] sm:$0xff] %vm1548_vm0, %v1504_v28  ;;  %v1263_v33 = vpop.permute.xlu1 %1262  ;;  %v859_v27 = vld [vmem:[%s3798_s1 + $0x580] sm:$0xff]  ;;  %v860_v28 = vld [vmem:[%s3798_s1 + $0x588] sm:$0xff] }
 0x136   :  { %v1509_v34 = vmul.f32 %v1263_v33, %v837_v29  ;;  %v1510_v35 = vmul.f32 %v1263_v33, %v838_v30  ;;  %v1258_v36 = vpop.permute.xlu0 %1257 }
 0x137   :  { %v1507_v37 = vmul.f32 %v1258_v36, %v835_v31  ;;  %v1508_v38 = vmul.f32 %v1258_v36, %v836_v32  ;;  %v866_v36 = vld [vmem:[%s3798_s1 + $0x5b8] sm:$0xff] }
 0x138   :  { %1702 = vst [vmem:[%s3799_s2 + $0x4d0] sm:$0xff] %v1509_v34  ;;  %1703 = vst.msk [vmem:[%s3799_s2 + $0x4d8] sm:$0xff] %vm1548_vm0, %v1510_v35  ;;  %v865_v35 = vld [vmem:[%s3798_s1 + $0x5b0] sm:$0xff] }
 0x139   :  { %1700 = vst [vmem:[%s3799_s2 + $0x4c0] sm:$0xff] %v1507_v37  ;;  %1701 = vst.msk [vmem:[%s3799_s2 + $0x4c8] sm:$0xff] %vm1548_vm0, %v1508_v38  ;;  %v1273_v43 = vpop.permute.xlu1 %1272  ;;  %v863_v37 = vld [vmem:[%s3798_s1 + $0x5a0] sm:$0xff]  ;;  %v864_v38 = vld [vmem:[%s3798_s1 + $0x5a8] sm:$0xff] }
 0x13a   :  { %v1513_v44 = vmul.f32 %v1273_v43, %v841_v39  ;;  %v1514_v45 = vmul.f32 %v1273_v43, %v842_v40  ;;  %v1268_v46 = vpop.permute.xlu0 %1267 }
 0x13b   :  { %v1511_v47 = vmul.f32 %v1268_v46, %v839_v41  ;;  %v1512_v48 = vmul.f32 %v1268_v46, %v840_v42  ;;  %v870_v46 = vld [vmem:[%s3798_s1 + $0x5d8] sm:$0xff] }
 0x13c   :  { %1706 = vst [vmem:[%s3799_s2 + $0x4f0] sm:$0xff] %v1513_v44  ;;  %1707 = vst.msk [vmem:[%s3799_s2 + $0x4f8] sm:$0xff] %vm1548_vm0, %v1514_v45  ;;  %v869_v45 = vld [vmem:[%s3798_s1 + $0x5d0] sm:$0xff] }
 0x13d   :  { %1704 = vst [vmem:[%s3799_s2 + $0x4e0] sm:$0xff] %v1511_v47  ;;  %1705 = vst.msk [vmem:[%s3799_s2 + $0x4e8] sm:$0xff] %vm1548_vm0, %v1512_v48  ;;  %v1283_v53 = vpop.permute.xlu1 %1282  ;;  %v867_v47 = vld [vmem:[%s3798_s1 + $0x5c0] sm:$0xff]  ;;  %v868_v48 = vld [vmem:[%s3798_s1 + $0x5c8] sm:$0xff] }
 0x13e   :  { %v1517_v54 = vmul.f32 %v1283_v53, %v845_v49  ;;  %v1518_v55 = vmul.f32 %v1283_v53, %v846_v50  ;;  %v1278_v56 = vpop.permute.xlu0 %1277 }
 0x13f   :  { %v1515_v57 = vmul.f32 %v1278_v56, %v843_v51  ;;  %v1516_v58 = vmul.f32 %v1278_v56, %v844_v52  ;;  %v874_v56 = vld [vmem:[%s3798_s1 + $0x5f8] sm:$0xff] }
 0x140   :  { %1710 = vst [vmem:[%s3799_s2 + $0x510] sm:$0xff] %v1517_v54  ;;  %1711 = vst.msk [vmem:[%s3799_s2 + $0x518] sm:$0xff] %vm1548_vm0, %v1518_v55  ;;  %v873_v55 = vld [vmem:[%s3798_s1 + $0x5f0] sm:$0xff] }
 0x141   :  { %1708 = vst [vmem:[%s3799_s2 + $0x500] sm:$0xff] %v1515_v57  ;;  %1709 = vst.msk [vmem:[%s3799_s2 + $0x508] sm:$0xff] %vm1548_vm0, %v1516_v58  ;;  %v1293_v63 = vpop.permute.xlu1 %1292  ;;  %v871_v57 = vld [vmem:[%s3798_s1 + $0x5e0] sm:$0xff]  ;;  %v872_v58 = vld [vmem:[%s3798_s1 + $0x5e8] sm:$0xff] }
 0x142   :  { %v1521_v0 = vmul.f32 %v1293_v63, %v849_v59  ;;  %v1522_v1 = vmul.f32 %v1293_v63, %v850_v60  ;;  %v1288_v2 = vpop.permute.xlu0 %1287 }
 0x143   :  { %v1519_v3 = vmul.f32 %v1288_v2, %v847_v61  ;;  %v1520_v4 = vmul.f32 %v1288_v2, %v848_v62 }
 0x144   :  { %1714 = vst [vmem:[%s3799_s2 + $0x530] sm:$0xff] %v1521_v0  ;;  %1715 = vst.msk [vmem:[%s3799_s2 + $0x538] sm:$0xff] %vm1548_vm0, %v1522_v1 }
 0x145   :  { %1712 = vst [vmem:[%s3799_s2 + $0x520] sm:$0xff] %v1519_v3  ;;  %1713 = vst.msk [vmem:[%s3799_s2 + $0x528] sm:$0xff] %vm1548_vm0, %v1520_v4  ;;  %v1303_v9 = vpop.permute.xlu1 %1302 }
 0x146   :  { %v1525_v10 = vmul.f32 %v1303_v9, %v853_v5  ;;  %v1526_v11 = vmul.f32 %v1303_v9, %v854_v6  ;;  %v1298_v12 = vpop.permute.xlu0 %1297 }
 0x147   :  { %v1523_v13 = vmul.f32 %v1298_v12, %v851_v7  ;;  %v1524_v14 = vmul.f32 %v1298_v12, %v852_v8 }
 0x148   :  { %1718 = vst [vmem:[%s3799_s2 + $0x550] sm:$0xff] %v1525_v10  ;;  %1719 = vst.msk [vmem:[%s3799_s2 + $0x558] sm:$0xff] %vm1548_vm0, %v1526_v11 }
 0x149   :  { %1716 = vst [vmem:[%s3799_s2 + $0x540] sm:$0xff] %v1523_v13  ;;  %1717 = vst.msk [vmem:[%s3799_s2 + $0x548] sm:$0xff] %vm1548_vm0, %v1524_v14  ;;  %v1313_v19 = vpop.permute.xlu1 %1312 }
 0x14a   :  { %v1529_v20 = vmul.f32 %v1313_v19, %v857_v15  ;;  %v1530_v21 = vmul.f32 %v1313_v19, %v858_v16  ;;  %v1308_v22 = vpop.permute.xlu0 %1307 }
 0x14b   :  { %v1527_v23 = vmul.f32 %v1308_v22, %v855_v17  ;;  %v1528_v24 = vmul.f32 %v1308_v22, %v856_v18 }
 0x14c   :  { %1722 = vst [vmem:[%s3799_s2 + $0x570] sm:$0xff] %v1529_v20  ;;  %1723 = vst.msk [vmem:[%s3799_s2 + $0x578] sm:$0xff] %vm1548_vm0, %v1530_v21 }
 0x14d   :  { %1720 = vst [vmem:[%s3799_s2 + $0x560] sm:$0xff] %v1527_v23  ;;  %1721 = vst.msk [vmem:[%s3799_s2 + $0x568] sm:$0xff] %vm1548_vm0, %v1528_v24  ;;  %v1323_v29 = vpop.permute.xlu1 %1322 }
 0x14e   :  { %v1533_v30 = vmul.f32 %v1323_v29, %v861_v25  ;;  %v1534_v31 = vmul.f32 %v1323_v29, %v862_v26  ;;  %v1318_v32 = vpop.permute.xlu0 %1317 }
 0x14f   :  { %v1531_v33 = vmul.f32 %v1318_v32, %v859_v27  ;;  %v1532_v34 = vmul.f32 %v1318_v32, %v860_v28 }
 0x150   :  { %1726 = vst [vmem:[%s3799_s2 + $0x590] sm:$0xff] %v1533_v30  ;;  %1727 = vst.msk [vmem:[%s3799_s2 + $0x598] sm:$0xff] %vm1548_vm0, %v1534_v31 }
 0x151   :  { %1724 = vst [vmem:[%s3799_s2 + $0x580] sm:$0xff] %v1531_v33  ;;  %1725 = vst.msk [vmem:[%s3799_s2 + $0x588] sm:$0xff] %vm1548_vm0, %v1532_v34  ;;  %v1333_v39 = vpop.permute.xlu1 %1332 }
 0x152   :  { %v1537_v40 = vmul.f32 %v1333_v39, %v865_v35  ;;  %v1538_v41 = vmul.f32 %v1333_v39, %v866_v36  ;;  %v1328_v42 = vpop.permute.xlu0 %1327 }
 0x153   :  { %v1535_v43 = vmul.f32 %v1328_v42, %v863_v37  ;;  %v1536_v44 = vmul.f32 %v1328_v42, %v864_v38 }
 0x154   :  { %1730 = vst [vmem:[%s3799_s2 + $0x5b0] sm:$0xff] %v1537_v40  ;;  %1731 = vst.msk [vmem:[%s3799_s2 + $0x5b8] sm:$0xff] %vm1548_vm0, %v1538_v41 }
 0x155   :  { %1728 = vst [vmem:[%s3799_s2 + $0x5a0] sm:$0xff] %v1535_v43  ;;  %1729 = vst.msk [vmem:[%s3799_s2 + $0x5a8] sm:$0xff] %vm1548_vm0, %v1536_v44  ;;  %v1343_v49 = vpop.permute.xlu1 %1342 }
 0x156   :  { %v1541_v50 = vmul.f32 %v1343_v49, %v869_v45  ;;  %v1542_v51 = vmul.f32 %v1343_v49, %v870_v46  ;;  %v1338_v52 = vpop.permute.xlu0 %1337 }
 0x157   :  { %v1539_v53 = vmul.f32 %v1338_v52, %v867_v47  ;;  %v1540_v54 = vmul.f32 %v1338_v52, %v868_v48 }
 0x158   :  { %1734 = vst [vmem:[%s3799_s2 + $0x5d0] sm:$0xff] %v1541_v50  ;;  %1735 = vst.msk [vmem:[%s3799_s2 + $0x5d8] sm:$0xff] %vm1548_vm0, %v1542_v51 }
 0x159   :  { %1732 = vst [vmem:[%s3799_s2 + $0x5c0] sm:$0xff] %v1539_v53  ;;  %1733 = vst.msk [vmem:[%s3799_s2 + $0x5c8] sm:$0xff] %vm1548_vm0, %v1540_v54  ;;  %v1353_v59 = vpop.permute.xlu1 %1352 }
 0x15a   :  { %v1545_v60 = vmul.f32 %v1353_v59, %v873_v55  ;;  %v1546_v61 = vmul.f32 %v1353_v59, %v874_v56  ;;  %v1348_v62 = vpop.permute.xlu0 %1347 }
 0x15b   :  { %v1543_v63 = vmul.f32 %v1348_v62, %v871_v57  ;;  %v1544_v0 = vmul.f32 %v1348_v62, %v872_v58 }
 0x15c   :  { %1738 = vst [vmem:[%s3799_s2 + $0x5f0] sm:$0xff] %v1545_v60  ;;  %1739 = vst.msk [vmem:[%s3799_s2 + $0x5f8] sm:$0xff] %vm1548_vm0, %v1546_v61 }
 0x15d   :  { %1736 = vst [vmem:[%s3799_s2 + $0x5e0] sm:$0xff] %v1543_v63  ;;  %1737 = vst.msk [vmem:[%s3799_s2 + $0x5e8] sm:$0xff] %vm1548_vm0, %v1544_v0 }

</bundles_post_ra>
